<compile_context>
chip_gen: v5e
topology: v5e:2x2
jax: 0.10.0
libtpu: 0.0.40
codegen_flags: <defaults>
</compile_context>

<pallas_src>
import functools

import numpy as np
import jax
import jax.numpy as jnp
from jax.experimental import pallas as pl
from jax.experimental.pallas import tpu as pltpu

LANES = 128
KH = 5
KW = 5


def _round_up(x, m):
    return ((x + m - 1) // m) * m


# ----------------------------------------------------------------------------
# Static size planning (pure Python ints) for one tile of `nt` images
# ----------------------------------------------------------------------------
def _plan(nt, h, w):
    sr = h                                   # per-image row stride in 2-D layout
    oh1, ow1 = h - KH + 1, w - KW + 1
    ph1, pw1 = oh1 // 2, ow1 // 2
    oh2, ow2 = ph1 - KH + 1, pw1 - KW + 1
    ph2, pw2 = oh2 // 2, ow2 // 2
    # rows at each stage (valid data sits at sparse row indices, garbage rows
    # in between are carried along and never read downstream)
    rp2 = (nt - 1) * sr + 4 * (ph2 - 1) + 1  # pool-2 rows ever read
    r2 = rp2 + 2                             # conv2 accumulator rows (pool shift 2)
    np1 = r2 + 2 * (KH - 1)                  # pool-1 rows ever read (conv2 taps)
    r1 = np1 + 1                             # conv1 accumulator rows (pool shift 1)
    r0 = max(nt * sr, r1 + KH - 1)           # input rows needed per tile
    r0p = _round_up(r0, 16)                  # bf16 sublane-pack aligned block rows
    return dict(sr=sr, oh1=oh1, ow1=ow1, ph1=ph1, pw1=pw1,
                oh2=oh2, ow2=ow2, ph2=ph2, pw2=pw2,
                rp2=rp2, r2=r2, np1=np1, r1=r1, r0=r0, r0p=r0p)


# ----------------------------------------------------------------------------
# One-time parameter preparation (host-side, outside the hot path)
# ----------------------------------------------------------------------------
def _conv_pool_weights(w_oihw, w_in):
    """Structured weights folding the W-direction conv + even/odd pool columns.

    Returns (KH, 128, 256): even/odd pool-column weights concatenated along the
    output-lane axis so each conv tap is ONE 256-wide MXU pass.
      A[i][win*IC + c, q*128 + p*OC + oc] = w[oc, c, i, win - (2p + q)]
    """
    oc, ic, kh, kw = w_oihw.shape
    ow = w_in - kw + 1
    pw = ow // 2
    wnp = np.asarray(w_oihw, dtype=np.float32)
    a = np.zeros((2, kh, LANES, LANES), np.float32)
    for q in (0, 1):
        for i in range(kh):
            for p in range(pw):
                for j in range(kw):
                    win = 2 * p + q + j
                    a[q, i, win * ic:(win + 1) * ic, p * oc:(p + 1) * oc] = \
                        wnp[:, :, i, j].T
    return np.concatenate([a[0], a[1]], axis=-1)       # (KH, 128, 256)


def _pool_bias_row(b, pw):
    oc = b.shape[0]
    row = np.zeros((LANES,), np.float32)
    row[:pw * oc] = np.tile(np.asarray(b, np.float32), pw)
    return row


def _bias_row(b):
    row = np.zeros((LANES,), np.float32)
    bnp = np.asarray(b, np.float32)
    row[:bnp.shape[0]] = bnp
    return row


def _pad_mat(w):
    out = np.zeros((LANES, LANES), np.float32)
    a = np.asarray(w, np.float32)
    out[:a.shape[0], :a.shape[1]] = a
    return out


def prepare_params(params, in_ch, spatial, num_classes):
    """Pack all weights into 3 arrays: conv_w (bf16), fc_w (bf16), bias (f32)."""
    plan = _plan(1, spatial, spatial)
    pw1, ph2, pw2 = plan["pw1"], plan["ph2"], plan["pw2"]
    oc1 = params["conv1_w"].shape[0]
    oc2 = params["conv2_w"].shape[0]

    assert ph2 >= 1, "input spatial size too small for LeNet5"
    assert spatial * in_ch <= LANES
    assert pw1 * oc1 <= LANES and pw2 * oc2 <= LANES
    assert params["fc1_w"].shape[0] == oc2 * ph2 * pw2
    assert params["fc1_w"].shape[1] <= LANES and params["fc2_w"].shape[1] <= LANES
    assert num_classes <= LANES

    # conv taps, layer 1 then layer 2: (2*KH, 128, 256)
    a1 = _conv_pool_weights(params["conv1_w"], w_in=spatial)
    a2 = _conv_pool_weights(params["conv2_w"], w_in=pw1)
    conv_w = np.concatenate([a1, a2], axis=0)

    # fc1 weights with the torch NCHW-flatten permutation folded in:
    # lane (pw2*oc2 + c) at pooled row hh -> torch-flatten row c*ph2*pw2 + hh*pw2 + w
    fc1_w = np.asarray(params["fc1_w"], np.float32)     # (fc_in, 120)
    n_h1 = fc1_w.shape[1]
    f1 = np.zeros((ph2, LANES, LANES), np.float32)
    for hh in range(ph2):
        for ww in range(pw2):
            for cc in range(oc2):
                f1[hh, ww * oc2 + cc, :n_h1] = fc1_w[cc * ph2 * pw2 + hh * pw2 + ww, :]
    # fc matrices packed: [f1_0 .. f1_{ph2-1}, f2, f3]  -> (ph2+2, 128, 128)
    fc_w = np.concatenate(
        [f1, _pad_mat(params["fc2_w"])[None], _pad_mat(params["fc3_w"])[None]], axis=0)

    # all bias rows in one (8, 128) f32 array (rows 5..7 unused padding)
    bias = np.zeros((8, LANES), np.float32)
    bias[0] = _pool_bias_row(params["conv1_b"], pw1)
    bias[1] = _pool_bias_row(params["conv2_b"], pw2)
    bias[2] = _bias_row(params["fc1_b"])
    bias[3] = _bias_row(params["fc2_b"])
    bias[4] = _bias_row(params["fc3_b"])

    return {
        "conv_w": jnp.asarray(conv_w, jnp.bfloat16),
        "fc_w": jnp.asarray(fc_w, jnp.bfloat16),
        "bias": jnp.asarray(bias, jnp.float32),
    }


# ----------------------------------------------------------------------------
# The fused Pallas kernel (one grid step == one tile of `nt` images)
# ----------------------------------------------------------------------------
def _lenet5_kernel(x_ref, cw_ref, fw_ref, b_ref, o_ref, p1_ref, p2_ref,
                   *, nt, sr, r1, r2, np1, rp2, ph2):
    f32 = jnp.float32
    bf16 = jnp.bfloat16

    # ---- conv1 + W-pool: one 256-wide MXU pass per tap ----------------------
    acc = jnp.dot(x_ref[0:r1, :], cw_ref[0], preferred_element_type=f32)
    for i in range(1, KH):
        acc = acc + jnp.dot(x_ref[i:i + r1, :], cw_ref[i],
                            preferred_element_type=f32)
    m1 = jnp.maximum(acc[:, :LANES], acc[:, LANES:])          # (r1, 128) f32
    # H-pool (row shift 1) + bias + ReLU; persist bf16 for the conv2 taps
    p1_ref[0:np1, :] = jnp.maximum(
        jnp.maximum(m1[0:np1, :], m1[1:np1 + 1, :]) + b_ref[0:1, :], 0.0
    ).astype(bf16)

    # ---- conv2 + W-pool: pool-1 rows are stride-2 sparse -> tap offset 2*i ---
    acc = jnp.dot(p1_ref[0:r2, :], cw_ref[KH], preferred_element_type=f32)
    for i in range(1, KH):
        acc = acc + jnp.dot(p1_ref[2 * i:2 * i + r2, :], cw_ref[KH + i],
                            preferred_element_type=f32)
    m2 = jnp.maximum(acc[:, :LANES], acc[:, LANES:])          # (r2, 128) f32
    # H-pool (row shift 2) + bias + ReLU
    p2_ref[0:rp2, :] = jnp.maximum(
        jnp.maximum(m2[0:rp2, :], m2[2:rp2 + 2, :]) + b_ref[1:2, :], 0.0
    ).astype(bf16)

    # ---- flatten (static row gather; torch ordering folded into fc1) + MLP --
    h = None
    for hh in range(ph2):
        # valid pooled row of image n sits at p2 row n*sr + 4*hh (static ints)
        rows = [p2_ref[n * sr + 4 * hh: n * sr + 4 * hh + 1, :] for n in range(nt)]
        s = jnp.concatenate(rows, axis=0)                      # (nt, 128) bf16
        d = jnp.dot(s, fw_ref[hh], preferred_element_type=f32)
        h = d if h is None else h + d
    h = jnp.maximum(h + b_ref[2:3, :], 0.0)
    h = jnp.maximum(
        jnp.dot(h.astype(bf16), fw_ref[ph2], preferred_element_type=f32)
        + b_ref[3:4, :], 0.0)
    o_ref[...] = (jnp.dot(h.astype(bf16), fw_ref[ph2 + 1],
                          preferred_element_type=f32)
                  + b_ref[4:5, :]).astype(o_ref.dtype)


# ----------------------------------------------------------------------------
# Forward wrapper: batch grid with resident weights
# ----------------------------------------------------------------------------
@functools.partial(jax.jit, static_argnames=("num_classes", "images_per_tile"))
def lenet5_forward(prep, x_nchw, *, num_classes, images_per_tile=8):
    n, c, h, w = x_nchw.shape
    nt = min(n, images_per_tile)             # images per grid step
    n_tiles = (n + nt - 1) // nt
    n_pad = n_tiles * nt
    plan = _plan(nt, h, w)
    sr, r1, r2, np1 = plan["sr"], plan["r1"], plan["r2"], plan["np1"]
    rp2, ph2, r0p = plan["rp2"], plan["ph2"], plan["r0p"]
    if n_tiles > 1:
        assert nt % 8 == 0                   # output block sublane alignment

    # NCHW -> per-tile 2-D layout: row = (image-in-tile)*H + h, lane = w*C + c,
    # zero-padded to (r0p rows, 128 lanes) per tile, cast to bf16.
    xf = x_nchw.astype(jnp.float32)
    if n_pad != n:
        xf = jnp.pad(xf, ((0, n_pad - n), (0, 0), (0, 0), (0, 0)))
    x2d = jnp.transpose(xf, (0, 2, 3, 1)).reshape(n_tiles, nt * sr, w * c)
    x2d = jnp.pad(x2d, ((0, 0), (0, r0p - nt * sr), (0, LANES - w * c)))
    x2d = x2d.reshape(n_tiles * r0p, LANES).astype(jnp.bfloat16)

    kernel = functools.partial(_lenet5_kernel, nt=nt, sr=sr, r1=r1, r2=r2,
                               np1=np1, rp2=rp2, ph2=ph2)
    cw_shape = prep["conv_w"].shape          # (2*KH, 128, 256)
    fw_shape = prep["fc_w"].shape            # (ph2+2, 128, 128)

    out = pl.pallas_call(
        kernel,
        out_shape=jax.ShapeDtypeStruct((n_pad, LANES), jnp.float32),
        grid_spec=pltpu.PrefetchScalarGridSpec(
            num_scalar_prefetch=0,
            grid=(n_tiles,),
            in_specs=[
                pl.BlockSpec((r0p, LANES), lambda t: (t, 0)),        # input tile
                pl.BlockSpec(cw_shape, lambda t: (0, 0, 0)),         # resident
                pl.BlockSpec(fw_shape, lambda t: (0, 0, 0)),         # resident
                pl.BlockSpec((8, LANES), lambda t: (0, 0)),          # resident
            ],
            out_specs=pl.BlockSpec((nt, LANES), lambda t: (t, 0)),
            scratch_shapes=[
                pltpu.VMEM((_round_up(np1, 16), LANES), jnp.bfloat16),  # p1
                pltpu.VMEM((_round_up(rp2, 16), LANES), jnp.bfloat16),  # p2
            ],
        ),
        compiler_params=pltpu.CompilerParams(
            dimension_semantics=("parallel",)),
    )(x2d, prep["conv_w"], prep["fc_w"], prep["bias"])

    return out[:n, :num_classes]


# ----------------------------------------------------------------------------
# Pure-JAX reference (f32; correctness check only)
# ----------------------------------------------------------------------------
def lenet5_reference(params, x_nchw):
    x = x_nchw.astype(jnp.float32)

    def conv(x, w, b):
        y = jax.lax.conv_general_dilated(
            x, w, window_strides=(1, 1), padding="VALID",
            dimension_numbers=("NCHW", "OIHW", "NCHW"))
        return jnp.maximum(y + b.reshape(1, -1, 1, 1), 0.0)

    def pool(x):
        return jax.lax.reduce_window(
            x, -jnp.inf, jax.lax.max,
            window_dimensions=(1, 1, 2, 2), window_strides=(1, 1, 2, 2),
            padding="VALID")

    x = pool(conv(x, params["conv1_w"], params["conv1_b"]))
    x = pool(conv(x, params["conv2_w"], params["conv2_b"]))
    x = x.reshape(x.shape[0], -1)
    x = jnp.maximum(x @ params["fc1_w"] + params["fc1_b"], 0.0)
    x = jnp.maximum(x @ params["fc2_w"] + params["fc2_b"], 0.0)
    return x @ params["fc3_w"] + params["fc3_b"]


# ----------------------------------------------------------------------------
# Deterministic parameter construction (synthetic; matches module shapes)
# ----------------------------------------------------------------------------
def make_params(key, spatial, in_ch, num_classes):
    d = spatial
    d = (d - 5 + 1) // 2
    d = (d - 5 + 1) // 2
    fc_in = 16 * d * d

    keys = jax.random.split(key, 10)
    norm = lambda k, s, scale: (scale * jax.random.normal(k, s)).astype(jnp.float32)
    return {
        "conv1_w": norm(keys[0], (6, in_ch, 5, 5), 0.1),
        "conv1_b": norm(keys[1], (6,), 0.1),
        "conv2_w": norm(keys[2], (16, 6, 5, 5), 0.1),
        "conv2_b": norm(keys[3], (16,), 0.1),
        # Linear weights stored as (in, out); equivalent to torch (out, in).T
        "fc1_w": norm(keys[4], (fc_in, 120), 0.1),
        "fc1_b": norm(keys[5], (120,), 0.1),
        "fc2_w": norm(keys[6], (120, 84), 0.1),
        "fc2_b": norm(keys[7], (84,), 0.1),
        "fc3_w": norm(keys[8], (84, num_classes), 0.1),
        "fc3_b": norm(keys[9], (num_classes,), 0.1),
    }


if __name__ == "__main__":
    # input_size = (16, 16, 3): spatial 16, 3 channels; num_classes = 10
    batch, in_ch, spatial, num_classes = 2, 3, 16, 10
    key = jax.random.PRNGKey(0)
    k_x, k_p = jax.random.split(key)

    x = jax.random.normal(k_x, (batch, in_ch, spatial, spatial), dtype=jnp.float32)
    params = make_params(k_p, spatial, in_ch, num_classes)
    prep = prepare_params(params, in_ch, spatial, num_classes)

    out = lenet5_forward(prep, x, num_classes=num_classes, images_per_tile=8)
    out = jax.block_until_ready(out)

    ref = lenet5_reference(params, x)
    assert out.shape == (batch, num_classes), out.shape
    # bf16 weights/activations (review item) -> loosen the f32 tolerance
    max_err = float(jnp.max(jnp.abs(out - ref)))
    assert jnp.allclose(out, ref, atol=3e-2, rtol=3e-2), (
        f"mismatch vs reference, max abs err = {max_err}")

    print("KERNEL_OK")
</pallas_src>

<mosaic_0001>
module attributes {stable_mosaic.version = 11 : i64} {
  func.func @_lenet5_kernel(%arg0: i32, %arg1: memref<32x128xbf16, #tpu.memory_space<vmem>>, %arg2: memref<10x128x256xbf16, #tpu.memory_space<vmem>>, %arg3: memref<3x128x128xbf16, #tpu.memory_space<vmem>>, %arg4: memref<8x128xf32, #tpu.memory_space<vmem>>, %arg5: memref<2x128xf32, #tpu.memory_space<vmem>>, %arg6: memref<32x128xbf16, #tpu.memory_space<vmem>>, %arg7: memref<32x128xbf16, #tpu.memory_space<vmem>>) attributes {dimension_semantics = [#tpu.dimension_semantics<parallel>], iteration_bounds = array<i64: 1>, scalar_prefetch = 0 : i64, scratch_operands = 2 : i64, tpu.core_type = #tpu.core_type<tc>, window_params = [{transform_indices = @transform_0, window_bounds = array<i64: 32, 128>}, {pipeline_mode = #tpu.pipeline_mode<synchronous>, transform_indices = @transform_1, window_bounds = array<i64: 10, 128, 256>}, {pipeline_mode = #tpu.pipeline_mode<synchronous>, transform_indices = @transform_2, window_bounds = array<i64: 3, 128, 128>}, {pipeline_mode = #tpu.pipeline_mode<synchronous>, transform_indices = @transform_3, window_bounds = array<i64: 8, 128>}, {transform_indices = @transform_4, window_bounds = array<i64: 2, 128>}]} {
    %c0 = arith.constant 0 : index
    %c0_0 = arith.constant 0 : index
    %0 = vector.load %arg1[%c0, %c0_0] : memref<32x128xbf16, #tpu.memory_space<vmem>>, vector<28x128xbf16>
    %c0_1 = arith.constant 0 : index
    %c0_2 = arith.constant 0 : index
    %c0_3 = arith.constant 0 : index
    %1 = vector.load %arg2[%c0_1, %c0_2, %c0_3] : memref<10x128x256xbf16, #tpu.memory_space<vmem>>, vector<1x128x256xbf16>
    %2 = vector.shape_cast %1 : vector<1x128x256xbf16> to vector<128x256xbf16>
    %cst = arith.constant dense<0.000000e+00> : vector<28x256xf32>
    %3 = tpu.matmul %0, %2, %cst {dimension_numbers = #tpu.dot_dimension_numbers<[1], [0], [0], [1], [0, 0, 1, 1], [], []>} : vector<28x128xbf16>, vector<128x256xbf16>, vector<28x256xf32> -> vector<28x256xf32>
    %c1 = arith.constant 1 : index
    %c0_4 = arith.constant 0 : index
    %4 = vector.load %arg1[%c1, %c0_4] : memref<32x128xbf16, #tpu.memory_space<vmem>>, vector<28x128xbf16>
    %c1_5 = arith.constant 1 : index
    %c0_6 = arith.constant 0 : index
    %c0_7 = arith.constant 0 : index
    %5 = vector.load %arg2[%c1_5, %c0_6, %c0_7] : memref<10x128x256xbf16, #tpu.memory_space<vmem>>, vector<1x128x256xbf16>
    %6 = vector.shape_cast %5 : vector<1x128x256xbf16> to vector<128x256xbf16>
    %cst_8 = arith.constant dense<0.000000e+00> : vector<28x256xf32>
    %7 = tpu.matmul %4, %6, %cst_8 {dimension_numbers = #tpu.dot_dimension_numbers<[1], [0], [0], [1], [0, 0, 1, 1], [], []>} : vector<28x128xbf16>, vector<128x256xbf16>, vector<28x256xf32> -> vector<28x256xf32>
    %8 = arith.addf %3, %7 : vector<28x256xf32>
    %c2 = arith.constant 2 : index
    %c0_9 = arith.constant 0 : index
    %9 = vector.load %arg1[%c2, %c0_9] : memref<32x128xbf16, #tpu.memory_space<vmem>>, vector<28x128xbf16>
    %c2_10 = arith.constant 2 : index
    %c0_11 = arith.constant 0 : index
    %c0_12 = arith.constant 0 : index
    %10 = vector.load %arg2[%c2_10, %c0_11, %c0_12] : memref<10x128x256xbf16, #tpu.memory_space<vmem>>, vector<1x128x256xbf16>
    %11 = vector.shape_cast %10 : vector<1x128x256xbf16> to vector<128x256xbf16>
    %cst_13 = arith.constant dense<0.000000e+00> : vector<28x256xf32>
    %12 = tpu.matmul %9, %11, %cst_13 {dimension_numbers = #tpu.dot_dimension_numbers<[1], [0], [0], [1], [0, 0, 1, 1], [], []>} : vector<28x128xbf16>, vector<128x256xbf16>, vector<28x256xf32> -> vector<28x256xf32>
    %13 = arith.addf %8, %12 : vector<28x256xf32>
    %c3 = arith.constant 3 : index
    %c0_14 = arith.constant 0 : index
    %14 = vector.load %arg1[%c3, %c0_14] : memref<32x128xbf16, #tpu.memory_space<vmem>>, vector<28x128xbf16>
    %c3_15 = arith.constant 3 : index
    %c0_16 = arith.constant 0 : index
    %c0_17 = arith.constant 0 : index
    %15 = vector.load %arg2[%c3_15, %c0_16, %c0_17] : memref<10x128x256xbf16, #tpu.memory_space<vmem>>, vector<1x128x256xbf16>
    %16 = vector.shape_cast %15 : vector<1x128x256xbf16> to vector<128x256xbf16>
    %cst_18 = arith.constant dense<0.000000e+00> : vector<28x256xf32>
    %17 = tpu.matmul %14, %16, %cst_18 {dimension_numbers = #tpu.dot_dimension_numbers<[1], [0], [0], [1], [0, 0, 1, 1], [], []>} : vector<28x128xbf16>, vector<128x256xbf16>, vector<28x256xf32> -> vector<28x256xf32>
    %18 = arith.addf %13, %17 : vector<28x256xf32>
    %c4 = arith.constant 4 : index
    %c0_19 = arith.constant 0 : index
    %19 = vector.load %arg1[%c4, %c0_19] : memref<32x128xbf16, #tpu.memory_space<vmem>>, vector<28x128xbf16>
    %c4_20 = arith.constant 4 : index
    %c0_21 = arith.constant 0 : index
    %c0_22 = arith.constant 0 : index
    %20 = vector.load %arg2[%c4_20, %c0_21, %c0_22] : memref<10x128x256xbf16, #tpu.memory_space<vmem>>, vector<1x128x256xbf16>
    %21 = vector.shape_cast %20 : vector<1x128x256xbf16> to vector<128x256xbf16>
    %cst_23 = arith.constant dense<0.000000e+00> : vector<28x256xf32>
    %22 = tpu.matmul %19, %21, %cst_23 {dimension_numbers = #tpu.dot_dimension_numbers<[1], [0], [0], [1], [0, 0, 1, 1], [], []>} : vector<28x128xbf16>, vector<128x256xbf16>, vector<28x256xf32> -> vector<28x256xf32>
    %23 = arith.addf %18, %22 : vector<28x256xf32>
    %24 = vector.extract_strided_slice %23 {offsets = [0, 0], sizes = [28, 128], strides = [1, 1]} : vector<28x256xf32> to vector<28x128xf32>
    %25 = vector.extract_strided_slice %23 {offsets = [0, 128], sizes = [28, 128], strides = [1, 1]} : vector<28x256xf32> to vector<28x128xf32>
    %26 = arith.maximumf %24, %25 : vector<28x128xf32>
    %27 = vector.extract_strided_slice %26 {offsets = [0, 0], sizes = [27, 128], strides = [1, 1]} : vector<28x128xf32> to vector<27x128xf32>
    %28 = vector.extract_strided_slice %26 {offsets = [1, 0], sizes = [27, 128], strides = [1, 1]} : vector<28x128xf32> to vector<27x128xf32>
    %29 = arith.maximumf %27, %28 : vector<27x128xf32>
    %c0_24 = arith.constant 0 : index
    %c0_25 = arith.constant 0 : index
    %30 = vector.load %arg4[%c0_24, %c0_25] : memref<8x128xf32, #tpu.memory_space<vmem>>, vector<1x128xf32>
    %31 = vector.broadcast %30 : vector<1x128xf32> to vector<27x128xf32>
    %32 = arith.addf %29, %31 : vector<27x128xf32>
    %cst_26 = arith.constant 0.000000e+00 : f32
    %33 = vector.broadcast %cst_26 : f32 to vector<27x128xf32>
    %34 = arith.maximumf %32, %33 : vector<27x128xf32>
    %35 = arith.truncf %34 : vector<27x128xf32> to vector<27x128xbf16>
    %c0_27 = arith.constant 0 : index
    %c0_28 = arith.constant 0 : index
    %36 = vector.load %arg6[%c0_27, %c0_28] : memref<32x128xbf16, #tpu.memory_space<vmem>>, vector<27x128xbf16>
    tpu.vector_store %arg6[%c0_27, %c0_28], %35 {strides = array<i32>} : memref<32x128xbf16, #tpu.memory_space<vmem>>, vector<27x128xbf16>,
    %c0_29 = arith.constant 0 : index
    %c0_30 = arith.constant 0 : index
    %37 = vector.load %arg6[%c0_29, %c0_30] : memref<32x128xbf16, #tpu.memory_space<vmem>>, vector<19x128xbf16>
    %c5 = arith.constant 5 : index
    %c0_31 = arith.constant 0 : index
    %c0_32 = arith.constant 0 : index
    %38 = vector.load %arg2[%c5, %c0_31, %c0_32] : memref<10x128x256xbf16, #tpu.memory_space<vmem>>, vector<1x128x256xbf16>
    %39 = vector.shape_cast %38 : vector<1x128x256xbf16> to vector<128x256xbf16>
    %cst_33 = arith.constant dense<0.000000e+00> : vector<19x256xf32>
    %40 = tpu.matmul %37, %39, %cst_33 {dimension_numbers = #tpu.dot_dimension_numbers<[1], [0], [0], [1], [0, 0, 1, 1], [], []>} : vector<19x128xbf16>, vector<128x256xbf16>, vector<19x256xf32> -> vector<19x256xf32>
    %c2_34 = arith.constant 2 : index
    %c0_35 = arith.constant 0 : index
    %41 = vector.load %arg6[%c2_34, %c0_35] : memref<32x128xbf16, #tpu.memory_space<vmem>>, vector<19x128xbf16>
    %c6 = arith.constant 6 : index
    %c0_36 = arith.constant 0 : index
    %c0_37 = arith.constant 0 : index
    %42 = vector.load %arg2[%c6, %c0_36, %c0_37] : memref<10x128x256xbf16, #tpu.memory_space<vmem>>, vector<1x128x256xbf16>
    %43 = vector.shape_cast %42 : vector<1x128x256xbf16> to vector<128x256xbf16>
    %cst_38 = arith.constant dense<0.000000e+00> : vector<19x256xf32>
    %44 = tpu.matmul %41, %43, %cst_38 {dimension_numbers = #tpu.dot_dimension_numbers<[1], [0], [0], [1], [0, 0, 1, 1], [], []>} : vector<19x128xbf16>, vector<128x256xbf16>, vector<19x256xf32> -> vector<19x256xf32>
    %45 = arith.addf %40, %44 : vector<19x256xf32>
    %c4_39 = arith.constant 4 : index
    %c0_40 = arith.constant 0 : index
    %46 = vector.load %arg6[%c4_39, %c0_40] : memref<32x128xbf16, #tpu.memory_space<vmem>>, vector<19x128xbf16>
    %c7 = arith.constant 7 : index
    %c0_41 = arith.constant 0 : index
    %c0_42 = arith.constant 0 : index
    %47 = vector.load %arg2[%c7, %c0_41, %c0_42] : memref<10x128x256xbf16, #tpu.memory_space<vmem>>, vector<1x128x256xbf16>
    %48 = vector.shape_cast %47 : vector<1x128x256xbf16> to vector<128x256xbf16>
    %cst_43 = arith.constant dense<0.000000e+00> : vector<19x256xf32>
    %49 = tpu.matmul %46, %48, %cst_43 {dimension_numbers = #tpu.dot_dimension_numbers<[1], [0], [0], [1], [0, 0, 1, 1], [], []>} : vector<19x128xbf16>, vector<128x256xbf16>, vector<19x256xf32> -> vector<19x256xf32>
    %50 = arith.addf %45, %49 : vector<19x256xf32>
    %c6_44 = arith.constant 6 : index
    %c0_45 = arith.constant 0 : index
    %51 = vector.load %arg6[%c6_44, %c0_45] : memref<32x128xbf16, #tpu.memory_space<vmem>>, vector<19x128xbf16>
    %c8 = arith.constant 8 : index
    %c0_46 = arith.constant 0 : index
    %c0_47 = arith.constant 0 : index
    %52 = vector.load %arg2[%c8, %c0_46, %c0_47] : memref<10x128x256xbf16, #tpu.memory_space<vmem>>, vector<1x128x256xbf16>
    %53 = vector.shape_cast %52 : vector<1x128x256xbf16> to vector<128x256xbf16>
    %cst_48 = arith.constant dense<0.000000e+00> : vector<19x256xf32>
    %54 = tpu.matmul %51, %53, %cst_48 {dimension_numbers = #tpu.dot_dimension_numbers<[1], [0], [0], [1], [0, 0, 1, 1], [], []>} : vector<19x128xbf16>, vector<128x256xbf16>, vector<19x256xf32> -> vector<19x256xf32>
    %55 = arith.addf %50, %54 : vector<19x256xf32>
    %c8_49 = arith.constant 8 : index
    %c0_50 = arith.constant 0 : index
    %56 = vector.load %arg6[%c8_49, %c0_50] : memref<32x128xbf16, #tpu.memory_space<vmem>>, vector<19x128xbf16>
    %c9 = arith.constant 9 : index
    %c0_51 = arith.constant 0 : index
    %c0_52 = arith.constant 0 : index
    %57 = vector.load %arg2[%c9, %c0_51, %c0_52] : memref<10x128x256xbf16, #tpu.memory_space<vmem>>, vector<1x128x256xbf16>
    %58 = vector.shape_cast %57 : vector<1x128x256xbf16> to vector<128x256xbf16>
    %cst_53 = arith.constant dense<0.000000e+00> : vector<19x256xf32>
    %59 = tpu.matmul %56, %58, %cst_53 {dimension_numbers = #tpu.dot_dimension_numbers<[1], [0], [0], [1], [0, 0, 1, 1], [], []>} : vector<19x128xbf16>, vector<128x256xbf16>, vector<19x256xf32> -> vector<19x256xf32>
    %60 = arith.addf %55, %59 : vector<19x256xf32>
    %61 = vector.extract_strided_slice %60 {offsets = [0, 0], sizes = [19, 128], strides = [1, 1]} : vector<19x256xf32> to vector<19x128xf32>
    %62 = vector.extract_strided_slice %60 {offsets = [0, 128], sizes = [19, 128], strides = [1, 1]} : vector<19x256xf32> to vector<19x128xf32>
    %63 = arith.maximumf %61, %62 : vector<19x128xf32>
    %64 = vector.extract_strided_slice %63 {offsets = [0, 0], sizes = [17, 128], strides = [1, 1]} : vector<19x128xf32> to vector<17x128xf32>
    %65 = vector.extract_strided_slice %63 {offsets = [2, 0], sizes = [17, 128], strides = [1, 1]} : vector<19x128xf32> to vector<17x128xf32>
    %66 = arith.maximumf %64, %65 : vector<17x128xf32>
    %c1_54 = arith.constant 1 : index
    %c0_55 = arith.constant 0 : index
    %67 = vector.load %arg4[%c1_54, %c0_55] : memref<8x128xf32, #tpu.memory_space<vmem>>, vector<1x128xf32>
    %68 = vector.broadcast %67 : vector<1x128xf32> to vector<17x128xf32>
    %69 = arith.addf %66, %68 : vector<17x128xf32>
    %cst_56 = arith.constant 0.000000e+00 : f32
    %70 = vector.broadcast %cst_56 : f32 to vector<17x128xf32>
    %71 = arith.maximumf %69, %70 : vector<17x128xf32>
    %72 = arith.truncf %71 : vector<17x128xf32> to vector<17x128xbf16>
    %c0_57 = arith.constant 0 : index
    %c0_58 = arith.constant 0 : index
    %73 = vector.load %arg7[%c0_57, %c0_58] : memref<32x128xbf16, #tpu.memory_space<vmem>>, vector<17x128xbf16>
    tpu.vector_store %arg7[%c0_57, %c0_58], %72 {strides = array<i32>} : memref<32x128xbf16, #tpu.memory_space<vmem>>, vector<17x128xbf16>,
    %c0_59 = arith.constant 0 : index
    %c0_60 = arith.constant 0 : index
    %74 = vector.load %arg7[%c0_59, %c0_60] : memref<32x128xbf16, #tpu.memory_space<vmem>>, vector<1x128xbf16>
    %c16 = arith.constant 16 : index
    %c0_61 = arith.constant 0 : index
    %75 = vector.load %arg7[%c16, %c0_61] : memref<32x128xbf16, #tpu.memory_space<vmem>>, vector<1x128xbf16>
    %76 = tpu.concatenate %74, %75 in 0 : vector<1x128xbf16>, vector<1x128xbf16> -> vector<2x128xbf16>
    %c0_62 = arith.constant 0 : index
    %c0_63 = arith.constant 0 : index
    %c0_64 = arith.constant 0 : index
    %77 = vector.load %arg3[%c0_62, %c0_63, %c0_64] : memref<3x128x128xbf16, #tpu.memory_space<vmem>>, vector<1x128x128xbf16>
    %78 = vector.shape_cast %77 : vector<1x128x128xbf16> to vector<128x128xbf16>
    %cst_65 = arith.constant dense<0.000000e+00> : vector<2x128xf32>
    %79 = tpu.matmul %76, %78, %cst_65 {dimension_numbers = #tpu.dot_dimension_numbers<[1], [0], [0], [1], [0, 0, 1, 1], [], []>} : vector<2x128xbf16>, vector<128x128xbf16>, vector<2x128xf32> -> vector<2x128xf32>
    %c2_66 = arith.constant 2 : index
    %c0_67 = arith.constant 0 : index
    %80 = vector.load %arg4[%c2_66, %c0_67] : memref<8x128xf32, #tpu.memory_space<vmem>>, vector<1x128xf32>
    %81 = vector.broadcast %80 : vector<1x128xf32> to vector<2x128xf32>
    %82 = arith.addf %79, %81 : vector<2x128xf32>
    %cst_68 = arith.constant 0.000000e+00 : f32
    %83 = vector.broadcast %cst_68 : f32 to vector<2x128xf32>
    %84 = arith.maximumf %82, %83 : vector<2x128xf32>
    %85 = arith.truncf %84 : vector<2x128xf32> to vector<2x128xbf16>
    %c1_69 = arith.constant 1 : index
    %c0_70 = arith.constant 0 : index
    %c0_71 = arith.constant 0 : index
    %86 = vector.load %arg3[%c1_69, %c0_70, %c0_71] : memref<3x128x128xbf16, #tpu.memory_space<vmem>>, vector<1x128x128xbf16>
    %87 = vector.shape_cast %86 : vector<1x128x128xbf16> to vector<128x128xbf16>
    %cst_72 = arith.constant dense<0.000000e+00> : vector<2x128xf32>
    %88 = tpu.matmul %85, %87, %cst_72 {dimension_numbers = #tpu.dot_dimension_numbers<[1], [0], [0], [1], [0, 0, 1, 1], [], []>} : vector<2x128xbf16>, vector<128x128xbf16>, vector<2x128xf32> -> vector<2x128xf32>
    %c3_73 = arith.constant 3 : index
    %c0_74 = arith.constant 0 : index
    %89 = vector.load %arg4[%c3_73, %c0_74] : memref<8x128xf32, #tpu.memory_space<vmem>>, vector<1x128xf32>
    %90 = vector.broadcast %89 : vector<1x128xf32> to vector<2x128xf32>
    %91 = arith.addf %88, %90 : vector<2x128xf32>
    %cst_75 = arith.constant 0.000000e+00 : f32
    %92 = vector.broadcast %cst_75 : f32 to vector<2x128xf32>
    %93 = arith.maximumf %91, %92 : vector<2x128xf32>
    %94 = arith.truncf %93 : vector<2x128xf32> to vector<2x128xbf16>
    %c2_76 = arith.constant 2 : index
    %c0_77 = arith.constant 0 : index
    %c0_78 = arith.constant 0 : index
    %95 = vector.load %arg3[%c2_76, %c0_77, %c0_78] : memref<3x128x128xbf16, #tpu.memory_space<vmem>>, vector<1x128x128xbf16>
    %96 = vector.shape_cast %95 : vector<1x128x128xbf16> to vector<128x128xbf16>
    %cst_79 = arith.constant dense<0.000000e+00> : vector<2x128xf32>
    %97 = tpu.matmul %94, %96, %cst_79 {dimension_numbers = #tpu.dot_dimension_numbers<[1], [0], [0], [1], [0, 0, 1, 1], [], []>} : vector<2x128xbf16>, vector<128x128xbf16>, vector<2x128xf32> -> vector<2x128xf32>
    %c4_80 = arith.constant 4 : index
    %c0_81 = arith.constant 0 : index
    %98 = vector.load %arg4[%c4_80, %c0_81] : memref<8x128xf32, #tpu.memory_space<vmem>>, vector<1x128xf32>
    %99 = vector.broadcast %98 : vector<1x128xf32> to vector<2x128xf32>
    %100 = arith.addf %97, %99 : vector<2x128xf32>
    %c0_82 = arith.constant 0 : index
    %c0_83 = arith.constant 0 : index
    %101 = vector.load %arg5[%c0_82, %c0_83] : memref<2x128xf32, #tpu.memory_space<vmem>>, vector<2x128xf32>
    tpu.vector_store %arg5[%c0_82, %c0_83], %100 {strides = array<i32>} : memref<2x128xf32, #tpu.memory_space<vmem>>, vector<2x128xf32>,
    return
  }
  func.func @transform_0(%arg0: i32) -> (i32, i32) {
    %c0_i32 = arith.constant 0 : i32
    %c0_i32_0 = arith.constant 0 : i32
    return %arg0, %c0_i32 : i32, i32
  }
  func.func @transform_1(%arg0: i32) -> (i32, i32, i32) {
    %c0_i32 = arith.constant 0 : i32
    %c0_i32_0 = arith.constant 0 : i32
    %c0_i32_1 = arith.constant 0 : i32
    %c0_i32_2 = arith.constant 0 : i32
    return %c0_i32, %c0_i32_0, %c0_i32_1 : i32, i32, i32
  }
  func.func @transform_2(%arg0: i32) -> (i32, i32, i32) {
    %c0_i32 = arith.constant 0 : i32
    %c0_i32_0 = arith.constant 0 : i32
    %c0_i32_1 = arith.constant 0 : i32
    %c0_i32_2 = arith.constant 0 : i32
    return %c0_i32, %c0_i32_0, %c0_i32_1 : i32, i32, i32
  }
  func.func @transform_3(%arg0: i32) -> (i32, i32) {
    %c0_i32 = arith.constant 0 : i32
    %c0_i32_0 = arith.constant 0 : i32
    %c0_i32_1 = arith.constant 0 : i32
    return %c0_i32, %c0_i32_0 : i32, i32
  }
  func.func @transform_4(%arg0: i32) -> (i32, i32) {
    %c0_i32 = arith.constant 0 : i32
    %c0_i32_0 = arith.constant 0 : i32
    return %arg0, %c0_i32 : i32, i32
  }
}

</mosaic_0001>

<bundles_post_ra>
// kernel: lenet5_forward.1
= control target key start
LH: loop header
LB: loop body
LE: loop exit
PB: predicated region body
PF: predicated region fallthrough
CT: control target
= control target key end

     0   :  { %9 = vsyncpa [#allocation5], 0  ;;  %s3273_s0 = inlined_call_operand.vmem [shape: bf16[32,128], index: 0, kind: input, shape index: {}]   ;;  %s3274_s1 = inlined_call_operand.hbm [shape: bf16[10,128,256], index: 1, kind: input, shape index: {}]   ;;  %s3275_s2 = inlined_call_operand.vmem [shape: bf16[3,128,128], index: 2, kind: input, shape index: {}]   ;;  %s3276_s3 = inlined_call_operand.vmem [shape: f32[8,128], index: 3, kind: input, shape index: {}]   ;;  %s3277_s4 = inlined_call_operand.hbm [shape: f32[2,128], index: 4, kind: output, shape index: {}]  }
   0x1   :  { %10 = vsyncpa [#allocation6], 0  ;;  %s17_s17 = sshll.u32 %s3274_s1, 4  ;;  %s2961_s18 = smov [#allocation4]   ;;  %s18_s17 = int_to_ptr.hbm [resolvable:$true] %s17_s17 }
   0x2   :  { %s19_s19 = sshll.u32 %s2961_s18, 4  ;;  %s2962_s20 = smov 128   ;;  %s20_s19 = int_to_ptr.vmem [resolvable:$true] %s19_s19 }
   0x3   :  { %s2963_s21 = smov 8  }
   0x4   :  { %25 = dma.hbm_to_vmem [thread:$0]  %s18_s17, 20480, %s20_s19, [#allocation5], %s2962_s20, %s2962_s20, %s2963_s21  }
   0x5   :  { %2945 = dma.done.wait [#allocation5], 20480  }
   0x6   :  { %2946 = vsyncadd [#allocation5], 4294946816  ;;  %v1976_v0 = vld [vmem:[#allocation4 + $0xf0] sm:$0xf]  ;;  %v2717_v1 = vld [vmem:[#allocation4 + $0xf4] sm:$0xf0] }
   0x7   :  { %v2716_v2 = vld [vmem:[#allocation4 + $0xf4] sm:$0xf]  ;;  %v1977_v3 = vor.u32 %v2717_v1, %v1976_v0  ;;  %v1978_v4 = vld [vmem:[#allocation4 + $0xf8] sm:$0xf0]  ;;  %v2040_v5 = vld [vmem:[#allocation4 + $0x70] sm:$0xf] }
   0x8   :  { %v2701_v6 = vld [vmem:[#allocation4 + $0x74] sm:$0xf0]  ;;  %v1981_v7 = vor.u32 %v2716_v2, %v1978_v4  ;;  %v2700_v9 = vld [vmem:[#allocation4 + $0x74] sm:$0xf]  ;;  %v2042_v10 = vld [vmem:[#allocation4 + $0x78] sm:$0xf0] }
   0x9   :  { %v2041_v8 = vor.u32 %v2701_v6, %v2040_v5  ;;  %v1968_v11 = vld [vmem:[#allocation4 + $0xe0] sm:$0xf]  ;;  %180 = vmatpush.bf16.msra.mxu0 %v1977_v3  ;;  %v2045_v12 = vor.u32 %v2700_v9, %v2042_v10  ;;  %v2715_v13 = vld [vmem:[#allocation4 + $0xe4] sm:$0xf0]  ;;  %v2714_v14 = vld [vmem:[#allocation4 + $0xe4] sm:$0xf] }
   0xa   :  { %v1970_v15 = vld [vmem:[#allocation4 + $0xe8] sm:$0xf0]  ;;  %199 = vmatpush.bf16.msra.mxu1 %v1981_v7  ;;  %v1969_v16 = vor.u32 %v2715_v13, %v1968_v11  ;;  %v2032_v18 = vld [vmem:[#allocation4 + $0x60] sm:$0xf]  ;;  %v2699_v19 = vld [vmem:[#allocation4 + $0x64] sm:$0xf0] }
   0xb   :  { %303 = vmatpush.bf16.msra.mxu2 %v2041_v8  ;;  %v1973_v17 = vor.u32 %v2714_v14, %v1970_v15  ;;  %v2698_v20 = vld [vmem:[#allocation4 + $0x64] sm:$0xf]  ;;  %322 = vmatpush.bf16.msra.mxu3 %v2045_v12  ;;  %v2033_v21 = vor.u32 %v2699_v19, %v2032_v18  ;;  %v2034_v22 = vld [vmem:[#allocation4 + $0x68] sm:$0xf0]  ;;  %v1960_v23 = vld [vmem:[#allocation4 + $0xd0] sm:$0xf] }
   0xc   :  { %v2713_v24 = vld [vmem:[#allocation4 + $0xd4] sm:$0xf0]  ;;  %v2037_v25 = vor.u32 %v2698_v20, %v2034_v22  ;;  %v2712_v26 = vld [vmem:[#allocation4 + $0xd4] sm:$0xf]  ;;  %v1962_v27 = vld [vmem:[#allocation4 + $0xd8] sm:$0xf0] }
   0xd   :  { %v2024_v28 = vld [vmem:[#allocation4 + $0x50] sm:$0xf]  ;;  %181 = vmatpush.bf16.msra.mxu0 %v1969_v16  ;;  %v1961_v29 = vor.u32 %v2713_v24, %v1960_v23  ;;  %v2697_v30 = vld [vmem:[#allocation4 + $0x54] sm:$0xf0]  ;;  %v2696_v31 = vld [vmem:[#allocation4 + $0x54] sm:$0xf]  ;;  %v1965_v33 = vor.u32 %v2712_v26, %v1962_v27 }
   0xe   :  { %v2026_v32 = vld [vmem:[#allocation4 + $0x58] sm:$0xf0]  ;;  %200 = vmatpush.bf16.msra.mxu1 %v1973_v17  ;;  %v2025_v34 = vor.u32 %v2697_v30, %v2024_v28  ;;  %v1952_v35 = vld [vmem:[#allocation4 + $0xc0] sm:$0xf]  ;;  %v2711_v36 = vld [vmem:[#allocation4 + $0xc4] sm:$0xf0] }
   0xf   :  { %304 = vmatpush.bf16.msra.mxu2 %v2033_v21  ;;  %v2710_v37 = vld [vmem:[#allocation4 + $0xc4] sm:$0xf]  ;;  %323 = vmatpush.bf16.msra.mxu3 %v2037_v25  ;;  %v2029_v38 = vor.u32 %v2696_v31, %v2026_v32  ;;  %v1954_v39 = vld [vmem:[#allocation4 + $0xc8] sm:$0xf0]  ;;  %v2016_v40 = vld [vmem:[#allocation4 + $0x40] sm:$0xf]  ;;  %v1953_v44 = vor.u32 %v2711_v36, %v1952_v35 }
  0x10   :  { %v2695_v41 = vld [vmem:[#allocation4 + $0x44] sm:$0xf0]  ;;  %v2694_v42 = vld [vmem:[#allocation4 + $0x44] sm:$0xf]  ;;  %v2018_v43 = vld [vmem:[#allocation4 + $0x48] sm:$0xf0]  ;;  %v1957_v45 = vor.u32 %v2710_v37, %v1954_v39 }
  0x11   :  { %182 = vmatpush.bf16.msra.mxu0 %v1961_v29  ;;  %v2017_v46 = vor.u32 %v2695_v41, %v2016_v40  ;;  %v1944_v47 = vld [vmem:[#allocation4 + $0xb0] sm:$0xf]  ;;  %v2709_v48 = vld [vmem:[#allocation4 + $0xb4] sm:$0xf0]  ;;  %v2708_v49 = vld [vmem:[#allocation4 + $0xb4] sm:$0xf]  ;;  %v2021_v50 = vor.u32 %v2694_v42, %v2018_v43 }
  0x12   :  { %201 = vmatpush.bf16.msra.mxu1 %v1965_v33  ;;  %v1946_v51 = vld [vmem:[#allocation4 + $0xb8] sm:$0xf0]  ;;  %v2008_v52 = vld [vmem:[#allocation4 + $0x30] sm:$0xf]  ;;  %v2693_v53 = vld [vmem:[#allocation4 + $0x34] sm:$0xf0]  ;;  %v1945_v56 = vor.u32 %v2709_v48, %v1944_v47 }
  0x13   :  { %305 = vmatpush.bf16.msra.mxu2 %v2025_v34  ;;  %324 = vmatpush.bf16.msra.mxu3 %v2029_v38  ;;  %v2692_v54 = vld [vmem:[#allocation4 + $0x34] sm:$0xf]  ;;  %v2010_v55 = vld [vmem:[#allocation4 + $0x38] sm:$0xf0]  ;;  %v1949_v57 = vor.u32 %v2708_v49, %v1946_v51  ;;  %v2009_v58 = vor.u32 %v2693_v53, %v2008_v52  ;;  %v1936_v59 = vld [vmem:[#allocation4 + $0xa0] sm:$0xf] }
  0x14   :  { %v2707_v60 = vld [vmem:[#allocation4 + $0xa4] sm:$0xf0]  ;;  %v2706_v61 = vld [vmem:[#allocation4 + $0xa4] sm:$0xf]  ;;  %v2013_v62 = vor.u32 %v2692_v54, %v2010_v55  ;;  %v1938_v63 = vld [vmem:[#allocation4 + $0xa8] sm:$0xf0] }
  0x15   :  { %183 = vmatpush.bf16.msra.mxu0 %v1953_v44  ;;  %v2000_v0 = vld [vmem:[#allocation4 + $0x20] sm:$0xf]  ;;  %v2691_v1 = vld [vmem:[#allocation4 + $0x24] sm:$0xf0]  ;;  %v2690_v2 = vld [vmem:[#allocation4 + $0x24] sm:$0xf]  ;;  %v1937_v4 = vor.u32 %v2707_v60, %v1936_v59  ;;  %v1941_v8 = vor.u32 %v2706_v61, %v1938_v63 }
  0x16   :  { %202 = vmatpush.bf16.msra.mxu1 %v1957_v45  ;;  %v2002_v3 = vld [vmem:[#allocation4 + $0x28] sm:$0xf0]  ;;  %v1928_v5 = vld [vmem:[#allocation4 + $0x90] sm:$0xf]  ;;  %v2705_v6 = vld [vmem:[#allocation4 + $0x94] sm:$0xf0]  ;;  %v2001_v9 = vor.u32 %v2691_v1, %v2000_v0 }
  0x17   :  { %306 = vmatpush.bf16.msra.mxu2 %v2017_v46  ;;  %325 = vmatpush.bf16.msra.mxu3 %v2021_v50  ;;  %v2704_v7 = vld [vmem:[#allocation4 + $0x94] sm:$0xf]  ;;  %v1930_v10 = vld [vmem:[#allocation4 + $0x98] sm:$0xf0]  ;;  %v1992_v11 = vld [vmem:[#allocation4 + $0x10] sm:$0xf]  ;;  %v2005_v13 = vor.u32 %v2690_v2, %v2002_v3  ;;  %v1929_v21 = vor.u32 %v2705_v6, %v1928_v5 }
  0x18   :  { %v2689_v12 = vld [vmem:[#allocation4 + $0x14] sm:$0xf0]  ;;  %v2688_v14 = vld [vmem:[#allocation4 + $0x14] sm:$0xf]  ;;  %v2996_v15 = vld [vmem:[%s3273_s0] sm:$0xff]   ;;  %v1933_v26 = vor.u32 %v2704_v7, %v1930_v10  ;;  %vm362_vm1 = vcmask 1046528  }
  0x19   :  { %184 = vmatpush.bf16.msra.mxu0 %v1945_v56  ;;  %v3001_v16 = vld [vmem:[%s3273_s0 + $0x8] sm:$0xff]   ;;  %v1994_v17 = vld [vmem:[#allocation4 + $0x18] sm:$0xf0]  ;;  %v86_v20 = vshll.u32 %v2996_v15, 16  ;;  %v1920_v22 = vld [vmem:[#allocation4 + $0x80] sm:$0xf]  ;;  %v1993_v27 = vor.u32 %v2689_v12, %v1992_v11 }
  0x1a   :  { %203 = vmatpush.bf16.msra.mxu1 %v1949_v57  ;;  %v54_v18 = vld [vmem:[%s3273_s0 + $0xc] sm:$0x7]  ;;  %v78_v19 = vunpack.c.l.b16 %v3001_v16  ;;  %v2703_v23 = vld [vmem:[#allocation4 + $0x84] sm:$0xf0]  ;;  %v84_v25 = vshrl.u32 %v2996_v15, 16  ;;  %v1997_v31 = vor.u32 %v2688_v14, %v1994_v17  ;;  %vm682_vm3 = vcmask 1045504  }
  0x1b   :  { %307 = vmatpush.bf16.msra.mxu2 %v2009_v58  ;;  %326 = vmatpush.bf16.msra.mxu3 %v2013_v62  ;;  %v79_v24 = vunpack.c.l.b16 %v54_v18  ;;  %v2702_v28 = vld [vmem:[#allocation4 + $0x84] sm:$0xf]  ;;  %v1922_v29 = vld [vmem:[#allocation4 + $0x88] sm:$0xf0]  ;;  %v88_v30 = vrot.slane %v86_v20, 1  ;;  %v1921_v39 = vor.u32 %v2703_v23, %v1920_v22  ;;  %vm855_vm4 = vcmask 1041408  }
  0x1c   :  { %v1984_v32 = vld [vmem:[#allocation4] sm:$0xf]  ;;  %v2687_v33 = vld [vmem:[#allocation4 + $0x4] sm:$0xf0]  ;;  %v2686_v34 = vld [vmem:[#allocation4 + $0x4] sm:$0xf]  ;;  %v1925_v44 = vor.u32 %v2702_v28, %v1922_v29 }
  0x1d   :  { %185 = vmatpush.bf16.msra.mxu0 %v1937_v4  ;;  %v3011_v35 = vpack.c.b16 %v79_v24, %v78_v19  ;;  %v1986_v36 = vld [vmem:[#allocation4 + $0x8] sm:$0xf0]  ;;  %v2104_v37 = vld [vmem:[#allocation4 + $0x170] sm:$0xf]  ;;  %v2733_v38 = vld [vmem:[#allocation4 + $0x174] sm:$0xf0]  ;;  %v89_v40 = vor.u32 %v88_v30, %v84_v25  ;;  %v1985_v45 = vor.u32 %v2687_v33, %v1984_v32 }
  0x1e   :  { %204 = vmatpush.bf16.msra.mxu1 %v1941_v8  ;;  %v2732_v42 = vld [vmem:[#allocation4 + $0x174] sm:$0xf]  ;;  %v2106_v43 = vld [vmem:[#allocation4 + $0x178] sm:$0xf0]  ;;  %vm82_vm0 = vsmask.f32 7424  ;;  %v1989_v47 = vor.u32 %v2686_v34, %v1986_v36  ;;  %v2105_v49 = vor.u32 %v2733_v38, %v2104_v37 }
  0x1f   :  { %308 = vmatpush.bf16.msra.mxu2 %v2001_v9  ;;  %327 = vmatpush.bf16.msra.mxu3 %v2005_v13  ;;  %v91_v41 = vshll.u32 %v3011_v35, 16  ;;  %v2168_v46 = vld [vmem:[#allocation4 + $0x1f0] sm:$0xf]  ;;  %v2749_v50 = vld [vmem:[#allocation4 + $0x1f4] sm:$0xf0]  ;;  %v2109_v52 = vor.u32 %v2732_v42, %v2106_v43  ;;  %v95_v23 = vshrl.u32 %v3011_v35, 16 }
  0x20   :  { %v2748_v51 = vld [vmem:[#allocation4 + $0x1f4] sm:$0xf]  ;;  %v2170_v53 = vld [vmem:[#allocation4 + $0x1f8] sm:$0xf0]  ;;  %v2096_v54 = vld [vmem:[#allocation4 + $0x160] sm:$0xf]  ;;  %v2169_v59 = vor.u32 %v2749_v50, %v2168_v46 }
  0x21   :  { %186 = vmatpush.bf16.msra.mxu0 %v1929_v21  ;;  %v3014_v48 = vrot.slane %v91_v41, 1  ;;  %v2731_v55 = vld [vmem:[#allocation4 + $0x164] sm:$0xf0]  ;;  %v2730_v57 = vld [vmem:[#allocation4 + $0x164] sm:$0xf]  ;;  %v2173_v60 = vor.u32 %v2748_v51, %v2170_v53  ;;  %vm1336_vm7 = vcmask 1044480  }
  0x22   :  { %205 = vmatpush.bf16.msra.mxu1 %v1933_v26  ;;  %v2098_v58 = vld [vmem:[#allocation4 + $0x168] sm:$0xf0]  ;;  %v2097_v61 = vor.u32 %v2731_v55, %v2096_v54  ;;  %v2160_v62 = vld [vmem:[#allocation4 + $0x1e0] sm:$0xf]  ;;  %v2747_v63 = vld [vmem:[#allocation4 + $0x1e4] sm:$0xf0] }
  0x23   :  { %309 = vmatpush.bf16.msra.mxu2 %v1993_v27  ;;  %328 = vmatpush.bf16.msra.mxu3 %v1997_v31  ;;  %v94_v56 = vsel %vm82_vm0, %v89_v40, %v3014_v48  ;;  %v2746_v0 = vld [vmem:[#allocation4 + $0x1e4] sm:$0xf]  ;;  %v2101_v1 = vor.u32 %v2730_v57, %v2098_v58  ;;  %v2162_v2 = vld [vmem:[#allocation4 + $0x1e8] sm:$0xf0]  ;;  %v2088_v3 = vld [vmem:[#allocation4 + $0x150] sm:$0xf]  ;;  %v2161_v7 = vor.u32 %v2747_v63, %v2160_v62  ;;  %v2873_v40 = vunpack.c.h.b16 %v2996_v15 }
  0x24   :  { %v2729_v4 = vld [vmem:[#allocation4 + $0x154] sm:$0xf0]  ;;  %v2728_v5 = vld [vmem:[#allocation4 + $0x154] sm:$0xf]  ;;  %v2090_v6 = vld [vmem:[#allocation4 + $0x158] sm:$0xf0]  ;;  %v2165_v8 = vor.u32 %v2746_v0, %v2162_v2  ;;  %v97_v46 = vor.u32 %v95_v23, %v3014_v48 }
  0x25   :  { %187 = vmatpush.bf16.msra.mxu0 %v1921_v39  ;;  %v2089_v9 = vor.u32 %v2729_v4, %v2088_v3  ;;  %v2152_v10 = vld [vmem:[#allocation4 + $0x1d0] sm:$0xf]  ;;  %v2745_v11 = vld [vmem:[#allocation4 + $0x1d4] sm:$0xf0]  ;;  %v2744_v12 = vld [vmem:[#allocation4 + $0x1d4] sm:$0xf]  ;;  %v2093_v13 = vor.u32 %v2728_v5, %v2090_v6 }
  0x26   :  { %206 = vmatpush.bf16.msra.mxu1 %v1925_v44  ;;  %v2154_v14 = vld [vmem:[#allocation4 + $0x1d8] sm:$0xf0]  ;;  %v2080_v17 = vld [vmem:[#allocation4 + $0x140] sm:$0xf]  ;;  %v2727_v18 = vld [vmem:[#allocation4 + $0x144] sm:$0xf0]  ;;  %v2153_v22 = vor.u32 %v2745_v11, %v2152_v10 }
  0x27   :  { %310 = vmatpush.bf16.msra.mxu2 %v1985_v45  ;;  %329 = vmatpush.bf16.msra.mxu3 %v1989_v47  ;;  %v2726_v20 = vld [vmem:[#allocation4 + $0x144] sm:$0xf]  ;;  %v2082_v21 = vld [vmem:[#allocation4 + $0x148] sm:$0xf0]  ;;  %v2157_v25 = vor.u32 %v2744_v12, %v2154_v14  ;;  %v2081_v26 = vor.u32 %v2727_v18, %v2080_v17  ;;  %v2144_v27 = vld [vmem:[#allocation4 + $0x1c0] sm:$0xf] }
  0x28   :  { %188 = vmatmul.bf16.vlgmr.msra.gmra.mxu0 %v94_v56  ;;  %v37_v24 = vld [vmem:[%s3273_s0 + $0xc] sm:$0x3]  ;;  %v2743_v28 = vld [vmem:[#allocation4 + $0x1c4] sm:$0xf0]  ;;  %v2742_v29 = vld [vmem:[#allocation4 + $0x1c4] sm:$0xf]  ;;  %v2085_v30 = vor.u32 %v2726_v20, %v2082_v21 }
  0x29   :  { %448 = vmatpush.bf16.msrb.mxu0 %v2105_v49  ;;  %207 = vmatmul.bf16.vlgmr.msra.gmra.mxu1 %v94_v56  ;;  %v2146_v31 = vld [vmem:[#allocation4 + $0x1c8] sm:$0xf0]  ;;  %v2072_v32 = vld [vmem:[#allocation4 + $0x130] sm:$0xf]  ;;  %v2725_v33 = vld [vmem:[#allocation4 + $0x134] sm:$0xf0]  ;;  %v219_v34 = vunpack.c.l.b16 %v37_v24  ;;  %v2145_v38 = vor.u32 %v2743_v28, %v2144_v27 }
  0x2a   :  { %467 = vmatpush.bf16.msrb.mxu1 %v2109_v52  ;;  %311 = vmatmul.bf16.vlgmr.msra.gmra.mxu2 %v2996_v15  ;;  %v2724_v36 = vld [vmem:[#allocation4 + $0x134] sm:$0xf]  ;;  %v2074_v37 = vld [vmem:[#allocation4 + $0x138] sm:$0xf0]  ;;  %v2136_v39 = vld [vmem:[#allocation4 + $0x1b0] sm:$0xf]  ;;  %v2149_v41 = vor.u32 %v2742_v29, %v2146_v31  ;;  %v2073_v42 = vor.u32 %v2725_v33, %v2072_v32 }
  0x2b   :  { %330 = vmatmul.bf16.vlgmr.msra.gmra.mxu3 %v2996_v15  ;;  %615 = vmatpush.bf16.msrb.mxu2 %v2169_v59  ;;  %v2741_v43 = vld [vmem:[#allocation4 + $0x1b4] sm:$0xf0]  ;;  %v2740_v44 = vld [vmem:[#allocation4 + $0x1b4] sm:$0xf]  ;;  %v341_v45 = vld [vmem:[%s3273_s0] sm:$0xe]  ;;  %v2077_v47 = vor.u32 %v2724_v36, %v2074_v37  ;;  %v220_v53 = vpack.c.b16 %v219_v34, %v78_v19 }
  0x2c   :  { %634 = vmatpush.bf16.msrb.mxu3 %v2173_v60  ;;  %v2138_v49 = vld [vmem:[#allocation4 + $0x1b8] sm:$0xf0]  ;;  %v2064_v50 = vld [vmem:[#allocation4 + $0x120] sm:$0xf]  ;;  %v2723_v51 = vld [vmem:[#allocation4 + $0x124] sm:$0xf0]  ;;  %v360_v52 = vunpack.c.l.b16 %v341_v45  ;;  %v2137_v56 = vor.u32 %v2741_v43, %v2136_v39 }
  0x2d   :  { %449 = vmatpush.bf16.msrb.mxu0 %v2097_v61  ;;  %v2722_v54 = vld [vmem:[#allocation4 + $0x124] sm:$0xf]  ;;  %v2066_v55 = vld [vmem:[#allocation4 + $0x128] sm:$0xf0]  ;;  %v2128_v57 = vld [vmem:[#allocation4 + $0x1a0] sm:$0xf]  ;;  %v2141_v48 = vor.u32 %v2740_v44, %v2138_v49  ;;  %v2065_v60 = vor.u32 %v2723_v51, %v2064_v50 }
  0x2e   :  { %468 = vmatpush.bf16.msrb.mxu1 %v2101_v1  ;;  %v2739_v58 = vld [vmem:[#allocation4 + $0x1a4] sm:$0xf0]  ;;  %v3032_v59 = vpack.c.b16 %v2873_v40, %v360_v52  ;;  %v2738_v61 = vld [vmem:[#allocation4 + $0x1a4] sm:$0xf]  ;;  %v2130_v62 = vld [vmem:[#allocation4 + $0x1a8] sm:$0xf0]  ;;  %v2069_v63 = vor.u32 %v2722_v54, %v2066_v55 }
  0x2f   :  { %616 = vmatpush.bf16.msrb.mxu2 %v2161_v7  ;;  %v2056_v19 = vld [vmem:[#allocation4 + $0x110] sm:$0xf]  ;;  %v2721_v0 = vld [vmem:[#allocation4 + $0x114] sm:$0xf0]  ;;  %v2720_v1 = vld [vmem:[#allocation4 + $0x114] sm:$0xf]  ;;  %v2129_v2 = vor.u32 %v2739_v58, %v2128_v57  ;;  %v2133_v12 = vor.u32 %v2738_v61, %v2130_v62 }
  0x30   :  { %635 = vmatpush.bf16.msrb.mxu3 %v2165_v8  ;;  %v2058_v3 = vld [vmem:[#allocation4 + $0x118] sm:$0xf0]  ;;  %v2120_v4 = vld [vmem:[#allocation4 + $0x190] sm:$0xf]  ;;  %v2737_v5 = vld [vmem:[#allocation4 + $0x194] sm:$0xf0] }
  0x31   :  { %450 = vmatpush.bf16.msrb.mxu0 %v2089_v9  ;;  %v2736_v6 = vld [vmem:[#allocation4 + $0x194] sm:$0xf]  ;;  %v2122_v7 = vld [vmem:[#allocation4 + $0x198] sm:$0xf0]  ;;  %v517_v8 = vshrl.u32 %v3032_v59, 16  ;;  %v520_v9 = vshll.u32 %v3032_v59, 16  ;;  %v2061_v20 = vor.u32 %v2720_v1, %v2058_v3  ;;  %v2121_v24 = vor.u32 %v2737_v5, %v2120_v4 }
  0x32   :  { %469 = vmatpush.bf16.msrb.mxu1 %v2093_v13  ;;  %v525_v10 = vshrl.u32 %v3001_v16, 16  ;;  %v528_v11 = vshll.u32 %v3001_v16, 16  ;;  %v2057_v13 = vor.u32 %v2721_v0, %v2056_v19  ;;  %v2048_v14 = vld [vmem:[#allocation4 + $0x100] sm:$0xf]  ;;  %v2719_v17 = vld [vmem:[#allocation4 + $0x104] sm:$0xf0]  ;;  %v2125_v33 = vor.u32 %v2736_v6, %v2122_v7 }
  0x33   :  { %617 = vmatpush.bf16.msrb.mxu2 %v2153_v22  ;;  %v2718_v18 = vld [vmem:[#allocation4 + $0x104] sm:$0xf]  ;;  %v2050_v21 = vld [vmem:[#allocation4 + $0x108] sm:$0xf0]  ;;  %v2112_v22 = vld [vmem:[#allocation4 + $0x180] sm:$0xf]  ;;  %v2049_v34 = vor.u32 %v2719_v17, %v2048_v14 }
  0x34   :  { %636 = vmatpush.bf16.msrb.mxu3 %v2157_v25  ;;  %v2735_v23 = vld [vmem:[#allocation4 + $0x184] sm:$0xf0]  ;;  %v2232_v25 = vld [vmem:[#allocation4 + $0x270] sm:$0xf]  ;;  %v2764_v27 = vld [vmem:[#allocation4 + $0x274] sm:$0xf]  ;;  %v2053_v37 = vor.u32 %v2718_v18, %v2050_v21 }
  0x35   :  { %451 = vmatpush.bf16.msrb.mxu0 %v2081_v26  ;;  %v2765_v26 = vld [vmem:[#allocation4 + $0x274] sm:$0xf0]  ;;  %v519_v28 = vrot.slane %v517_v8, 1  ;;  %v522_v29 = vrot.slane %v520_v9, 2  ;;  %v530_v31 = vrot.slane %v528_v11, 2  ;;  %v363_v39 = vrot.slane %v3032_v59, 1 }
  0x36   :  { %470 = vmatpush.bf16.msrb.mxu1 %v2085_v30  ;;  %v527_v30 = vrot.slane %v525_v10, 1  ;;  %v2234_v32 = vld [vmem:[#allocation4 + $0x278] sm:$0xf0]  ;;  %v2734_v36 = vld [vmem:[#allocation4 + $0x184] sm:$0xf]  ;;  %v2113_v43 = vor.u32 %v2735_v23, %v2112_v22  ;;  %vm1641_vm8 = vcmask 1040384  }
  0x37   :  { %618 = vmatpush.bf16.msrb.mxu2 %v2145_v38  ;;  %v2114_v38 = vld [vmem:[#allocation4 + $0x188] sm:$0xf0]  ;;  %v2237_v44 = vor.u32 %v2764_v27, %v2234_v32  ;;  %vm515_vm2 = vsmask.f32 6400  ;;  %v523_v45 = vor.u32 %v522_v29, %v519_v28  ;;  %v2224_v49 = vld [vmem:[#allocation4 + $0x260] sm:$0xf] }
  0x38   :  { %637 = vmatpush.bf16.msrb.mxu3 %v2149_v41  ;;  %193 = vmatmul.bf16.gmra.mxu0 %v97_v46  ;;  %v3040_v41 = vrot.slane %v3011_v35, 1  ;;  %v2763_v50 = vld [vmem:[#allocation4 + $0x264] sm:$0xf0]  ;;  %v2762_v51 = vld [vmem:[#allocation4 + $0x264] sm:$0xf]  ;;  %s2964_s8 = smov [#allocation7]  }
  0x39   :  { %452 = vmatpush.bf16.msrb.mxu0 %v2073_v42  ;;  %212 = vmatmul.bf16.gmra.mxu1 %v97_v46  ;;  %v2233_v42 = vor.u32 %v2765_v26, %v2232_v25  ;;  %v531_v46 = vor.u32 %v530_v31, %v527_v30  ;;  %v2226_v52 = vld [vmem:[#allocation4 + $0x268] sm:$0xf0]  ;;  %v2225_v54 = vor.u32 %v2763_v50, %v2224_v49  ;;  %v2761_v57 = vld [vmem:[#allocation4 + $0x254] sm:$0xf0]  ;;  %v2760_v58 = vld [vmem:[#allocation4 + $0x254] sm:$0xf] }
  0x3a   :  { %471 = vmatpush.bf16.msrb.mxu1 %v2077_v47  ;;  %316 = vmatmul.bf16.gmra.mxu2 %v220_v53  ;;  %v2117_v47 = vor.u32 %v2734_v36, %v2114_v38  ;;  %v365_v35 = vsel %vm362_vm1, %v363_v39, %v3040_v41  ;;  %v2229_v55 = vor.u32 %v2762_v51, %v2226_v52  ;;  %v2218_v59 = vld [vmem:[#allocation4 + $0x258] sm:$0xf0]  ;;  %v2208_v61 = vld [vmem:[#allocation4 + $0x240] sm:$0xf]  ;;  %v2759_v62 = vld [vmem:[#allocation4 + $0x244] sm:$0xf0] }
  0x3b   :  { %335 = vmatmul.bf16.gmra.mxu3 %v220_v53  ;;  %619 = vmatpush.bf16.msrb.mxu2 %v2137_v56  ;;  %v532_v53 = vsel %vm515_vm2, %v523_v45, %v531_v46  ;;  %v2216_v56 = vld [vmem:[#allocation4 + $0x250] sm:$0xf]  ;;  %v2210_v19 = vld [vmem:[#allocation4 + $0x248] sm:$0xf0]  ;;  %v2209_v0 = vor.u32 %v2759_v62, %v2208_v61  ;;  %v2757_v3 = vld [vmem:[#allocation4 + $0x234] sm:$0xf0] }
  0x3c   :  { %638 = vmatpush.bf16.msrb.mxu3 %v2141_v48  ;;  %v2217_v48 = vor.u32 %v2761_v57, %v2216_v56  ;;  %v2756_v4 = vld [vmem:[#allocation4 + $0x234] sm:$0xf]  ;;  %v2202_v5 = vld [vmem:[#allocation4 + $0x238] sm:$0xf0]  ;;  %v2192_v8 = vld [vmem:[#allocation4 + $0x220] sm:$0xf] }
  0x3d   :  { %453 = vmatpush.bf16.msrb.mxu0 %v2065_v60  ;;  %v2221_v60 = vor.u32 %v2760_v58, %v2218_v59  ;;  %v2205_v7 = vor.u32 %v2756_v4, %v2202_v5  ;;  %v2755_v9 = vld [vmem:[#allocation4 + $0x224] sm:$0xf0]  ;;  %v2754_v10 = vld [vmem:[#allocation4 + $0x224] sm:$0xf]  ;;  %v2194_v11 = vld [vmem:[#allocation4 + $0x228] sm:$0xf0] }
  0x3e   :  { %472 = vmatpush.bf16.msrb.mxu1 %v2069_v63  ;;  %v2758_v63 = vld [vmem:[#allocation4 + $0x244] sm:$0xf]  ;;  %v2197_v14 = vor.u32 %v2754_v10, %v2194_v11  ;;  %v2184_v17 = vld [vmem:[#allocation4 + $0x210] sm:$0xf]  ;;  %v2753_v18 = vld [vmem:[#allocation4 + $0x214] sm:$0xf0] }
  0x3f   :  { %620 = vmatpush.bf16.msrb.mxu2 %v2129_v2  ;;  %v2213_v1 = vor.u32 %v2758_v63, %v2210_v19  ;;  %v2200_v2 = vld [vmem:[#allocation4 + $0x230] sm:$0xf]  ;;  %v2186_v21 = vld [vmem:[#allocation4 + $0x218] sm:$0xf0]  ;;  %v2185_v23 = vor.u32 %v2753_v18, %v2184_v17  ;;  %v2176_v25 = vld [vmem:[#allocation4 + $0x200] sm:$0xf] }
  0x40   :  { %639 = vmatpush.bf16.msrb.mxu3 %v2133_v12  ;;  %v2201_v6 = vor.u32 %v2757_v3, %v2200_v2  ;;  %v2193_v12 = vor.u32 %v2755_v9, %v2192_v8  ;;  %v2751_v26 = vld [vmem:[#allocation4 + $0x204] sm:$0xf0]  ;;  %v2750_v27 = vld [vmem:[#allocation4 + $0x204] sm:$0xf]  ;;  %v2178_v28 = vld [vmem:[#allocation4 + $0x208] sm:$0xf0] }
  0x41   :  { %454 = vmatpush.bf16.msrb.mxu0 %v2057_v13  ;;  %v661_v13 = vld [vmem:[%s3273_s0] sm:$0xc]  ;;  %v2177_v30 = vor.u32 %v2751_v26, %v2176_v25  ;;  %v2181_v31 = vor.u32 %v2750_v27, %v2178_v28  ;;  %v2781_v49 = vld [vmem:[#allocation4 + $0x2f4] sm:$0xf0]  ;;  %v2780_v50 = vld [vmem:[#allocation4 + $0x2f4] sm:$0xf] }
  0x42   :  { %473 = vmatpush.bf16.msrb.mxu1 %v2061_v20  ;;  %v2752_v20 = vld [vmem:[#allocation4 + $0x214] sm:$0xf]  ;;  %v680_v22 = vunpack.c.l.b16 %v661_v13  ;;  %v2352_v56 = vld [vmem:[#allocation4 + $0x2e0] sm:$0xf]  ;;  %v2779_v57 = vld [vmem:[#allocation4 + $0x2e4] sm:$0xf0] }
  0x43   :  { %621 = vmatpush.bf16.msrb.mxu2 %v2121_v24  ;;  %v2189_v24 = vor.u32 %v2752_v20, %v2186_v21  ;;  %v2778_v58 = vld [vmem:[#allocation4 + $0x2e4] sm:$0xf]  ;;  %v2353_v59 = vor.u32 %v2779_v57, %v2352_v56  ;;  %v2344_v62 = vld [vmem:[#allocation4 + $0x2d0] sm:$0xf]  ;;  %v2777_v63 = vld [vmem:[#allocation4 + $0x2d4] sm:$0xf0] }
  0x44   :  { %640 = vmatpush.bf16.msrb.mxu3 %v2125_v33  ;;  %v681_v29 = vpack.c.b16 %v2873_v40, %v680_v22  ;;  %v684_v33 = vrot.slane %v3001_v16, 2  ;;  %v2776_v19 = vld [vmem:[#allocation4 + $0x2d4] sm:$0xf]  ;;  %v2346_v2 = vld [vmem:[#allocation4 + $0x2d8] sm:$0xf0]  ;;  %s1906_s9 = sshll.u32 %s2964_s8, 4  ;;  %s1907_s9 = int_to_ptr.vmem [resolvable:$true] %s1906_s9 }
  0x45   :  { %455 = vmatpush.bf16.msrb.mxu0 %v2049_v34  ;;  %v2349_v3 = vor.u32 %v2776_v19, %v2346_v2  ;;  %v2336_v5 = vld [vmem:[#allocation4 + $0x2c0] sm:$0xf]  ;;  %v2338_v10 = vld [vmem:[#allocation4 + $0x2c8] sm:$0xf0]  ;;  %v2328_v13 = vld [vmem:[#allocation4 + $0x2b0] sm:$0xf] }
  0x46   :  { %474 = vmatpush.bf16.msrb.mxu1 %v2053_v37  ;;  %v683_v32 = vrot.slane %v681_v29, 2  ;;  %v2772_v17 = vld [vmem:[#allocation4 + $0x2b4] sm:$0xf]  ;;  %v2330_v21 = vld [vmem:[#allocation4 + $0x2b8] sm:$0xf0] }
  0x47   :  { %622 = vmatpush.bf16.msrb.mxu2 %v2113_v43  ;;  %v2333_v22 = vor.u32 %v2772_v17, %v2330_v21  ;;  %v2770_v25 = vld [vmem:[#allocation4 + $0x2a4] sm:$0xf]  ;;  %v2322_v27 = vld [vmem:[#allocation4 + $0x2a8] sm:$0xf0]  ;;  %v2768_v57 = vld [vmem:[#allocation4 + $0x294] sm:$0xf] }
  0x48   :  { %641 = vmatpush.bf16.msrb.mxu3 %v2117_v47  ;;  %456 = vmatmul.bf16.vlgmr.msrb.gmra.mxu0 %v365_v35  ;;  %v685_v34 = vsel %vm682_vm3, %v683_v32, %v684_v33  ;;  %v2360_v47 = vld [vmem:[#allocation4 + $0x2f0] sm:$0xf]  ;;  %v2325_v29 = vor.u32 %v2770_v25, %v2322_v27  ;;  %v2797_v32 = vld [vmem:[#allocation4 + $0x374] sm:$0xf0]  ;;  %v2290_v2 = vld [vmem:[#allocation4 + $0x368] sm:$0xf0] }
  0x49   :  { %768 = vmatpush.bf16.msra.mxu0 %v2233_v42  ;;  %475 = vmatmul.bf16.vlgmr.msrb.gmra.mxu1 %v365_v35  ;;  %v2361_v52 = vor.u32 %v2781_v49, %v2360_v47  ;;  %v2362_v35 = vld [vmem:[#allocation4 + $0x2f8] sm:$0xf0]  ;;  %v2793_v17 = vld [vmem:[#allocation4 + $0x354] sm:$0xf0]  ;;  %vm856_vm5 = vsmask.f32 1280 }
  0x4a   :  { %787 = vmatpush.bf16.msra.mxu1 %v2237_v44  ;;  %623 = vmatmul.bf16.vlgmr.msrb.gmra.mxu2 %v532_v53  ;;  %v2298_v49 = vld [vmem:[#allocation4 + $0x378] sm:$0xf0]  ;;  %vm3159_vm6 = vmand %vm855_vm4, %vm856_vm5  ;;  %vm1642_vm9 = vsmask.f32 256 }
  0x4b   :  { %642 = vmatmul.bf16.vlgmr.msrb.gmra.mxu3 %v532_v53  ;;  %vm3217_vm10 = vmand %vm1641_vm8, %vm1642_vm9 }
  0x4d   :  { %769 = vmatpush.bf16.msra.mxu0 %v2225_v54  ;;  %v2365_v54 = vor.u32 %v2780_v50, %v2362_v35  ;;  %v2312_v50 = vld [vmem:[#allocation4 + $0x290] sm:$0xf] }
  0x4e   :  { %788 = vmatpush.bf16.msra.mxu1 %v2229_v55 }
  0x51   :  { %770 = vmatpush.bf16.msra.mxu0 %v2217_v48  ;;  %v2354_v48 = vld [vmem:[#allocation4 + $0x2e8] sm:$0xf0] }
  0x52   :  { %789 = vmatpush.bf16.msra.mxu1 %v2221_v60  ;;  %v2357_v60 = vor.u32 %v2778_v58, %v2354_v48  ;;  %v2314_v58 = vld [vmem:[#allocation4 + $0x298] sm:$0xf0] }
  0x55   :  { %771 = vmatpush.bf16.msra.mxu0 %v2209_v0 }
  0x56   :  { %790 = vmatpush.bf16.msra.mxu1 %v2213_v1  ;;  %v2345_v1 = vor.u32 %v2777_v63, %v2344_v62  ;;  %v2795_v62 = vld [vmem:[#allocation4 + $0x364] sm:$0xf0]  ;;  %v2794_v63 = vld [vmem:[#allocation4 + $0x364] sm:$0xf] }
  0x58   :  { %461 = vmatmul.bf16.gmra.mxu0 %v3040_v41 }
  0x59   :  { %772 = vmatpush.bf16.msra.mxu0 %v2201_v6  ;;  %480 = vmatmul.bf16.gmra.mxu1 %v3040_v41  ;;  %v2775_v6 = vld [vmem:[#allocation4 + $0x2c4] sm:$0xf0] }
  0x5a   :  { %791 = vmatpush.bf16.msra.mxu1 %v2205_v7  ;;  %628 = vmatmul.bf16.gmra.mxu2 %v531_v46  ;;  %v2774_v7 = vld [vmem:[#allocation4 + $0x2c4] sm:$0xf]  ;;  %v2337_v9 = vor.u32 %v2775_v6, %v2336_v5  ;;  %v2767_v5 = vld [vmem:[#allocation4 + $0x284] sm:$0xf0] }
  0x5b   :  { %647 = vmatmul.bf16.gmra.mxu3 %v531_v46  ;;  %v2341_v11 = vor.u32 %v2774_v7, %v2338_v10  ;;  %v2293_v7 = vor.u32 %v2794_v63, %v2290_v2  ;;  %v2766_v10 = vld [vmem:[#allocation4 + $0x284] sm:$0xf]  ;;  %v2480_v2 = vld [vmem:[#allocation4 + $0x460] sm:$0xf] }
  0x5d   :  { %773 = vmatpush.bf16.msra.mxu0 %v2193_v12 }
  0x5e   :  { %792 = vmatpush.bf16.msra.mxu1 %v2197_v14  ;;  %v2773_v14 = vld [vmem:[#allocation4 + $0x2b4] sm:$0xf0] }
  0x5f   :  { %v2329_v20 = vor.u32 %v2773_v14, %v2328_v13  ;;  %v2280_v14 = vld [vmem:[#allocation4 + $0x350] sm:$0xf] }
  0x61   :  { %774 = vmatpush.bf16.msra.mxu0 %v2185_v23  ;;  %v2320_v23 = vld [vmem:[#allocation4 + $0x2a0] sm:$0xf] }
  0x62   :  { %793 = vmatpush.bf16.msra.mxu1 %v2189_v24  ;;  %v2771_v24 = vld [vmem:[#allocation4 + $0x2a4] sm:$0xf0] }
  0x63   :  { %v2321_v26 = vor.u32 %v2771_v24, %v2320_v23  ;;  %v2282_v23 = vld [vmem:[#allocation4 + $0x358] sm:$0xf0] }
  0x65   :  { %775 = vmatpush.bf16.msra.mxu0 %v2177_v30 }
  0x66   :  { %794 = vmatpush.bf16.msra.mxu1 %v2181_v31  ;;  %v2296_v31 = vld [vmem:[#allocation4 + $0x370] sm:$0xf] }
  0x67   :  { %v2297_v47 = vor.u32 %v2797_v32, %v2296_v31  ;;  %v2790_v31 = vld [vmem:[#allocation4 + $0x344] sm:$0xf] }
  0x68   :  { %776 = vmatmul.bf16.vlgmr.msra.gmra.mxu0 %v685_v34 }
  0x69   :  { %795 = vmatmul.bf16.vlgmr.msra.gmra.mxu1 %v685_v34  ;;  %1117 = vmatpush.bf16.msrb.mxu0 %v2361_v52  ;;  %v2769_v52 = vld [vmem:[#allocation4 + $0x294] sm:$0xf0] }
  0x6a   :  { %1135 = vmatpush.bf16.msrb.mxu1 %v2365_v54  ;;  %v2313_v56 = vor.u32 %v2769_v52, %v2312_v50  ;;  %993 = vmatpush.bf16.msra.mxu2 %v2297_v47  ;;  %v2274_v47 = vld [vmem:[#allocation4 + $0x348] sm:$0xf0]  ;;  %v2829_v50 = vld [vmem:[#allocation4 + $0x474] sm:$0xf0] }
  0x6d   :  { %1118 = vmatpush.bf16.msrb.mxu0 %v2353_v59  ;;  %v2317_v59 = vor.u32 %v2768_v57, %v2314_v58  ;;  %v2828_v57 = vld [vmem:[#allocation4 + $0x474] sm:$0xf]  ;;  %v2490_v58 = vld [vmem:[#allocation4 + $0x478] sm:$0xf0] }
  0x6e   :  { %1136 = vmatpush.bf16.msrb.mxu1 %v2357_v60  ;;  %v2288_v60 = vld [vmem:[#allocation4 + $0x360] sm:$0xf] }
  0x71   :  { %1119 = vmatpush.bf16.msrb.mxu0 %v2345_v1  ;;  %v2289_v1 = vor.u32 %v2795_v62, %v2288_v60  ;;  %v2789_v60 = vld [vmem:[#allocation4 + $0x334] sm:$0xf0] }
  0x72   :  { %1137 = vmatpush.bf16.msrb.mxu1 %v2349_v3  ;;  %v2304_v3 = vld [vmem:[#allocation4 + $0x280] sm:$0xf] }
  0x73   :  { %994 = vmatpush.bf16.msra.mxu2 %v2289_v1  ;;  %v2266_v1 = vld [vmem:[#allocation4 + $0x338] sm:$0xf0] }
  0x75   :  { %1120 = vmatpush.bf16.msrb.mxu0 %v2337_v9  ;;  %v2305_v9 = vor.u32 %v2767_v5, %v2304_v3 }
  0x76   :  { %1138 = vmatpush.bf16.msrb.mxu1 %v2341_v11  ;;  %v2306_v11 = vld [vmem:[#allocation4 + $0x288] sm:$0xf0] }
  0x78   :  { %781 = vmatmul.bf16.gmra.mxu0 %v684_v33 }
  0x79   :  { %800 = vmatmul.bf16.gmra.mxu1 %v684_v33  ;;  %1121 = vmatpush.bf16.msrb.mxu0 %v2329_v20  ;;  %v2796_v33 = vld [vmem:[#allocation4 + $0x374] sm:$0xf] }
  0x7a   :  { %1139 = vmatpush.bf16.msrb.mxu1 %v2333_v22  ;;  %v2301_v54 = vor.u32 %v2796_v33, %v2298_v49  ;;  %v2281_v22 = vor.u32 %v2793_v17, %v2280_v14  ;;  %v2488_v49 = vld [vmem:[#allocation4 + $0x470] sm:$0xf] }
  0x7c   :  { %1011 = vmatpush.bf16.msra.mxu3 %v2301_v54  ;;  %995 = vmatpush.bf16.msra.mxu2 %v2281_v22  ;;  %v2277_v54 = vor.u32 %v2790_v31, %v2274_v47  ;;  %v2248_v22 = vld [vmem:[#allocation4 + $0x310] sm:$0xf] }
  0x7d   :  { %1122 = vmatpush.bf16.msrb.mxu0 %v2321_v26 }
  0x7e   :  { %1140 = vmatpush.bf16.msrb.mxu1 %v2325_v29  ;;  %v2791_v29 = vld [vmem:[#allocation4 + $0x344] sm:$0xf0] }
  0x80   :  { %1012 = vmatpush.bf16.msra.mxu3 %v2293_v7  ;;  %v2826_v7 = vld [vmem:[#allocation4 + $0x464] sm:$0xf] }
  0x81   :  { %1123 = vmatpush.bf16.msrb.mxu0 %v2313_v56  ;;  %v2489_v56 = vor.u32 %v2829_v50, %v2488_v49 }
  0x82   :  { %1141 = vmatpush.bf16.msrb.mxu1 %v2317_v59 }
  0x85   :  { %1124 = vmatpush.bf16.msrb.mxu0 %v2305_v9  ;;  %v2482_v9 = vld [vmem:[#allocation4 + $0x468] sm:$0xf0] }
  0x86   :  { %v2485_v17 = vor.u32 %v2826_v7, %v2482_v9  ;;  %v2458_v9 = vld [vmem:[#allocation4 + $0x438] sm:$0xf0] }
  0x89   :  { %1422 = vmatpush.bf16.msra.mxu0 %v2489_v56  ;;  %v2242_v56 = vld [vmem:[#allocation4 + $0x308] sm:$0xf0] }
  0xa5   :  { %v3053_v36 = vpop.f32.mrf.mxu0 }
  0xa6   :  { %v3055_v15 = vpop.f32.mrf.mxu1 }
  0xad   :  { %v3057_v40 = vpop.f32.mrf.mxu0  ;;  %v3061_v38 = vpop.f32.mrf.mxu2 }
  0xae   :  { %v3059_v37 = vpop.f32.mrf.mxu1  ;;  %v3063_v16 = vpop.f32.mrf.mxu3  ;;  %v313_v48 = vadd.f32 %v3061_v38, %v3053_v36  ;;  %v2309_v38 = vor.u32 %v2766_v10, %v2306_v11 }
  0xaf   :  { %v332_v19 = vadd.f32 %v3063_v16, %v3055_v15  ;;  %v2792_v15 = vld [vmem:[#allocation4 + $0x354] sm:$0xf] }
  0xb0   :  { %1142 = vmatpush.bf16.msrb.mxu1 %v2309_v38  ;;  %v2285_v26 = vor.u32 %v2792_v15, %v2282_v23  ;;  %v2787_v38 = vld [vmem:[#allocation4 + $0x324] sm:$0xf0]  ;;  %v2785_v23 = vld [vmem:[#allocation4 + $0x314] sm:$0xf0] }
  0xb2   :  { %1013 = vmatpush.bf16.msra.mxu3 %v2285_v26 }
  0xb5   :  { %v3065_v39 = vpop.f32.mrf.mxu0  ;;  %v3069_v42 = vpop.f32.mrf.mxu2 }
  0xb6   :  { %v3067_v41 = vpop.f32.mrf.mxu1  ;;  %v3073_v44 = vpop.f32.mrf.mxu3  ;;  %1014 = vmatpush.bf16.msra.mxu3 %v2277_v54  ;;  %v2782_v54 = vld [vmem:[#allocation4 + $0x304] sm:$0xf] }
  0xbd   :  { %v3071_v43 = vpop.f32.mrf.mxu0  ;;  %v3081_v53 = vpop.f32.mrf.mxu2 }
  0xbe   :  { %v3075_v45 = vpop.f32.mrf.mxu1  ;;  %v3083_v55 = vpop.f32.mrf.mxu3  ;;  %v318_v10 = vadd.f32 %v3081_v53, %v3065_v39  ;;  %v2784_v53 = vld [vmem:[#allocation4 + $0x314] sm:$0xf] }
  0xbf   :  { %v337_v15 = vadd.f32 %v3083_v55, %v3067_v41  ;;  %v2825_v55 = vld [vmem:[#allocation4 + $0x454] sm:$0xf0] }
  0xc5   :  { %v3077_v46 = vpop.f32.mrf.mxu0  ;;  %v3089_v4 = vpop.f32.mrf.mxu2 }
  0xc6   :  { %v3079_v51 = vpop.f32.mrf.mxu1  ;;  %v3091_v8 = vpop.f32.mrf.mxu3  ;;  %v486_v6 = vadd.f32 %v3077_v46, %v313_v48  ;;  %v2264_v48 = vld [vmem:[#allocation4 + $0x330] sm:$0xf] }
  0xc7   :  { %v487_v36 = vadd.f32 %v3079_v51, %v332_v19  ;;  %v315_v51 = vadd.f32 %v3069_v42, %v3057_v40  ;;  %v2493_v42 = vor.u32 %v2828_v57, %v2490_v58  ;;  %v2265_v19 = vor.u32 %v2789_v60, %v2264_v48  ;;  %v2464_v57 = vld [vmem:[#allocation4 + $0x440] sm:$0xf]  ;;  %v2822_v48 = vld [vmem:[#allocation4 + $0x444] sm:$0xf] }
  0xc9   :  { %1440 = vmatpush.bf16.msra.mxu1 %v2493_v42 }
  0xcd   :  { %v3085_v61 = vpop.f32.mrf.mxu0  ;;  %v624_v28 = vpop.f32.mrf.mxu2  ;;  %1441 = vmatpush.bf16.msra.mxu1 %v2485_v17 }
  0xce   :  { %v3087_v0 = vpop.f32.mrf.mxu1  ;;  %v643_v30 = vpop.f32.mrf.mxu3  ;;  %v653_v13 = vadd.f32 %v624_v28, %v486_v6  ;;  %v2272_v28 = vld [vmem:[#allocation4 + $0x340] sm:$0xf]  ;;  %v488_v52 = vadd.f32 %v3085_v61, %v315_v51  ;;  %v2788_v61 = vld [vmem:[#allocation4 + $0x334] sm:$0xf] }
  0xcf   :  { %v654_v16 = vadd.f32 %v643_v30, %v487_v36  ;;  %v334_v30 = vadd.f32 %v3073_v44, %v3059_v37  ;;  %v2273_v33 = vor.u32 %v2791_v29, %v2272_v28  ;;  %v2269_v6 = vor.u32 %v2788_v61, %v2266_v1  ;;  %v2256_v36 = vld [vmem:[#allocation4 + $0x320] sm:$0xf]  ;;  %v2824_v51 = vld [vmem:[#allocation4 + $0x454] sm:$0xf] }
  0xd0   :  { %v2249_v29 = vor.u32 %v2785_v23, %v2248_v22  ;;  %v339_v61 = vadd.f32 %v3091_v8, %v3075_v45 }
  0xd1   :  { %v489_v40 = vadd.f32 %v3087_v0, %v334_v30  ;;  %996 = vmatpush.bf16.msra.mxu2 %v2273_v33  ;;  %v2827_v0 = vld [vmem:[#allocation4 + $0x464] sm:$0xf0]  ;;  %1015 = vmatpush.bf16.msra.mxu3 %v2269_v6  ;;  %v2474_v30 = vld [vmem:[#allocation4 + $0x458] sm:$0xf0]  ;;  %v2820_v6 = vld [vmem:[#allocation4 + $0x434] sm:$0xf] }
  0xd2   :  { %v2481_v14 = vor.u32 %v2827_v0, %v2480_v2  ;;  %v2783_v33 = vld [vmem:[#allocation4 + $0x304] sm:$0xf0]  ;;  %v2245_v2 = vor.u32 %v2782_v54, %v2242_v56 }
  0xd4   :  { %1423 = vmatpush.bf16.msra.mxu0 %v2481_v14 }
  0xd5   :  { %v3093_v12 = vpop.f32.mrf.mxu0  ;;  %v626_v20 = vpop.f32.mrf.mxu2  ;;  %997 = vmatpush.bf16.msra.mxu2 %v2265_v19 }
  0xd6   :  { %v3095_v18 = vpop.f32.mrf.mxu1  ;;  %v645_v46 = vpop.f32.mrf.mxu3  ;;  %v655_v59 = vadd.f32 %v626_v20, %v488_v52  ;;  %v2257_v20 = vor.u32 %v2787_v38, %v2256_v36  ;;  %v2424_v36 = vld [vmem:[#allocation4 + $0x3f0] sm:$0xf]  ;;  %v2813_v38 = vld [vmem:[#allocation4 + $0x3f4] sm:$0xf0] }
  0xd7   :  { %v656_v37 = vadd.f32 %v645_v46, %v489_v40  ;;  %v490_v46 = vadd.f32 %v3093_v12, %v318_v10  ;;  %v491_v26 = vadd.f32 %v3095_v18, %v337_v15  ;;  %v2240_v12 = vld [vmem:[#allocation4 + $0x300] sm:$0xf]  ;;  %v2477_v18 = vor.u32 %v2824_v51, %v2474_v30  ;;  %v2818_v51 = vld [vmem:[#allocation4 + $0x424] sm:$0xf] }
  0xd8   :  { %v2241_v19 = vor.u32 %v2783_v33, %v2240_v12  ;;  %v2461_v10 = vor.u32 %v2820_v6, %v2458_v9  ;;  %v2425_v15 = vor.u32 %v2813_v38, %v2424_v36  ;;  %v2408_v12 = vld [vmem:[#allocation4 + $0x3d0] sm:$0xf]  ;;  %v2809_v33 = vld [vmem:[#allocation4 + $0x3d4] sm:$0xf0]  ;;  %v2434_v6 = vld [vmem:[#allocation4 + $0x408] sm:$0xf0] }
  0xd9   :  { %998 = vmatpush.bf16.msra.mxu2 %v2257_v20  ;;  %1442 = vmatpush.bf16.msra.mxu1 %v2477_v18  ;;  %v2426_v20 = vld [vmem:[#allocation4 + $0x3f8] sm:$0xf0]  ;;  %v2817_v18 = vld [vmem:[#allocation4 + $0x414] sm:$0xf0]  ;;  %v858_v38 = vld [vmem:[#allocation2 + $0xc] sm:$0x3] }
  0xda   :  { %v2840_v36 = vld [vmem:[#allocation4 + $0x4d4] sm:$0xf] }
  0xdd   :  { %v3097_v34 = vpop.f32.mrf.mxu0  ;;  %v629_v3 = vpop.f32.mrf.mxu2  ;;  %999 = vmatpush.bf16.msra.mxu2 %v2249_v29 }
  0xde   :  { %v3099_v35 = vpop.f32.mrf.mxu1  ;;  %v648_v11 = vpop.f32.mrf.mxu3  ;;  %v657_v28 = vadd.f32 %v629_v3, %v490_v46  ;;  %v2456_v3 = vld [vmem:[#allocation4 + $0x430] sm:$0xf] }
  0xdf   :  { %v658_v47 = vadd.f32 %v648_v11, %v491_v26  ;;  %v493_v45 = vadd.f32 %v3099_v35, %v339_v61  ;;  %v2811_v35 = vld [vmem:[#allocation4 + $0x3e4] sm:$0xf0]  ;;  %v2448_v26 = vld [vmem:[#allocation4 + $0x420] sm:$0xf] }
  0xe0   :  { %v2432_v61 = vld [vmem:[#allocation4 + $0x400] sm:$0xf] }
  0xe1   :  { %1000 = vmatpush.bf16.msra.mxu2 %v2241_v19  ;;  %v2402_v19 = vld [vmem:[#allocation4 + $0x3c8] sm:$0xf0] }
  0xe5   :  { %v777_v21 = vpop.f32.mrf.mxu0  ;;  %v631_v1 = vpop.f32.mrf.mxu2  ;;  %1263 = vmatpush.bf16.msrb.mxu2 %v2425_v15 }
  0xe6   :  { %v806_v24 = vadd.f32 %v777_v21, %v653_v13  ;;  %v796_v25 = vpop.f32.mrf.mxu1  ;;  %v2786_v13 = vld [vmem:[#allocation4 + $0x324] sm:$0xf]  ;;  %v2258_v21 = vld [vmem:[#allocation4 + $0x328] sm:$0xf0]  ;;  %v650_v7 = vpop.f32.mrf.mxu3 }
  0xe7   :  { %v807_v27 = vadd.f32 %v796_v25, %v654_v16  ;;  %v2261_v39 = vor.u32 %v2786_v13, %v2258_v21  ;;  %v2472_v25 = vld [vmem:[#allocation4 + $0x450] sm:$0xf]  ;;  %v660_v13 = vadd.f32 %v650_v7, %v493_v45  ;;  %v2416_v21 = vld [vmem:[#allocation4 + $0x3e0] sm:$0xf] }
  0xe8   :  { %v2473_v31 = vor.u32 %v2825_v55, %v2472_v25  ;;  %v2418_v25 = vld [vmem:[#allocation4 + $0x3e8] sm:$0xf0]  ;;  %v2819_v55 = vld [vmem:[#allocation4 + $0x424] sm:$0xf0] }
  0xe9   :  { %v3111_v32 = vmax.f32 %v806_v24, %v807_v27  ;;  %v2250_v24 = vld [vmem:[#allocation4 + $0x318] sm:$0xf0]  ;;  %1016 = vmatpush.bf16.msra.mxu3 %v2261_v39  ;;  %v2449_v30 = vor.u32 %v2819_v55, %v2448_v26  ;;  %v2801_v26 = vld [vmem:[#allocation4 + $0x394] sm:$0xf0] }
  0xea   :  { %v2253_v52 = vor.u32 %v2784_v53, %v2250_v24  ;;  %1424 = vmatpush.bf16.msra.mxu0 %v2473_v31  ;;  %v2810_v24 = vld [vmem:[#allocation4 + $0x3e4] sm:$0xf]  ;;  %v2378_v55 = vld [vmem:[#allocation4 + $0x398] sm:$0xf0] }
  0xeb   :  { %v823_v27 = vrot.slane %v3111_v32, 1  ;;  %v2421_v31 = vor.u32 %v2810_v24, %v2418_v25  ;;  %v2386_v24 = vld [vmem:[#allocation4 + $0x3a8] sm:$0xf0]  ;;  %v2376_v25 = vld [vmem:[#allocation4 + $0x390] sm:$0xf] }
  0xed   :  { %v779_v44 = vpop.f32.mrf.mxu0  ;;  %1017 = vmatpush.bf16.msra.mxu3 %v2253_v52  ;;  %v2440_v52 = vld [vmem:[#allocation4 + $0x410] sm:$0xf] }
  0xee   :  { %v808_v62 = vadd.f32 %v779_v44, %v655_v59  ;;  %v798_v63 = vpop.f32.mrf.mxu1  ;;  %v2823_v59 = vld [vmem:[#allocation4 + $0x444] sm:$0xf0] }
  0xef   :  { %v809_v5 = vadd.f32 %v798_v63, %v656_v37  ;;  %v2466_v37 = vld [vmem:[#allocation4 + $0x448] sm:$0xf0]  ;;  %v2465_v60 = vor.u32 %v2823_v59, %v2464_v57  ;;  %v320_v63 = vadd.f32 %v3089_v4, %v3071_v43  ;;  %v3137_v43 = vld [vmem:[%s3276_s3] ss:$0 sm:$0xff]  ;;  %v2816_v57 = vld [vmem:[#allocation4 + $0x414] sm:$0xf]  ;;  %v2441_v59 = vor.u32 %v2817_v18, %v2440_v52 }
  0xf1   :  { %v3119_v16 = vmax.f32 %v808_v62, %v809_v5  ;;  %v2469_v62 = vor.u32 %v2822_v48, %v2466_v37  ;;  %v2821_v5 = vld [vmem:[#allocation4 + $0x434] sm:$0xf0]  ;;  %v492_v0 = vadd.f32 %v3097_v34, %v320_v63  ;;  %1425 = vmatpush.bf16.msra.mxu0 %v2465_v60  ;;  %v2812_v34 = vld [vmem:[#allocation4 + $0x3f4] sm:$0xf]  ;;  %1018 = vmatpush.bf16.msra.mxu3 %v2245_v2  ;;  %v2400_v48 = vld [vmem:[#allocation4 + $0x3c0] sm:$0xf] }
  0xf2   :  { %v2457_v4 = vor.u32 %v2821_v5, %v2456_v3  ;;  %v2429_v53 = vor.u32 %v2812_v34, %v2426_v20  ;;  %v2807_v37 = vld [vmem:[#allocation4 + $0x3c4] sm:$0xf0]  ;;  %v2806_v63 = vld [vmem:[#allocation4 + $0x3c4] sm:$0xf] }
  0xf3   :  { %v824_v41 = vrot.slane %v3119_v16, 1  ;;  %1443 = vmatpush.bf16.msra.mxu1 %v2469_v62  ;;  %v659_v11 = vadd.f32 %v631_v1, %v492_v0  ;;  %v2815_v3 = vld [vmem:[#allocation4 + $0x404] sm:$0xf0]  ;;  %v2814_v5 = vld [vmem:[#allocation4 + $0x404] sm:$0xf] }
  0xf4   :  { %v2433_v9 = vor.u32 %v2815_v3, %v2432_v61  ;;  %v2845_v61 = vld [vmem:[#allocation4 + $0x4f4] sm:$0xf0]  ;;  %v2554_v3 = vld [vmem:[#allocation4 + $0x4f8] sm:$0xf0] }
  0xf5   :  { %v825_v49 = vsel %vm362_vm1, %v823_v27, %v824_v41  ;;  %v782_v50 = vpop.f32.mrf.mxu0  ;;  %1426 = vmatpush.bf16.msra.mxu0 %v2457_v4  ;;  %1281 = vmatpush.bf16.msrb.mxu3 %v2429_v53  ;;  %v2401_v4 = vor.u32 %v2807_v37, %v2400_v48 }
  0xf6   :  { %v834_v58 = vmax.f32 %v3111_v32, %v825_v49  ;;  %v810_v40 = vadd.f32 %v782_v50, %v657_v28  ;;  %v801_v42 = vpop.f32.mrf.mxu1  ;;  %v2450_v28 = vld [vmem:[#allocation4 + $0x428] sm:$0xf0]  ;;  %v2410_v50 = vld [vmem:[#allocation4 + $0x3d8] sm:$0xf0] }
  0xf7   :  { %v811_v44 = vadd.f32 %v801_v42, %v658_v47  ;;  %1444 = vmatpush.bf16.msra.mxu1 %v2461_v10  ;;  %v2808_v47 = vld [vmem:[#allocation4 + $0x3d4] sm:$0xf]  ;;  %v2409_v42 = vor.u32 %v2809_v33, %v2408_v12  ;;  %v2437_v10 = vor.u32 %v2814_v5, %v2434_v6  ;;  %v2798_v12 = vld [vmem:[#allocation4 + $0x384] sm:$0xf]  ;;  %v2544_v5 = vld [vmem:[#allocation4 + $0x4e0] sm:$0xf] }
  0xf8   :  { %v840_v22 = vadd.f32 %v3137_v43, %v834_v58  ;;  %v2442_v58 = vld [vmem:[#allocation4 + $0x418] sm:$0xf0]  ;;  %v2413_v60 = vor.u32 %v2808_v47, %v2410_v50  ;;  %v2843_v6 = vld [vmem:[#allocation4 + $0x4e4] sm:$0xf0] }
  0xf9   :  { %v3131_v32 = vmax.f32 %v810_v40, %v811_v44  ;;  %1427 = vmatpush.bf16.msra.mxu0 %v2449_v30  ;;  %1282 = vmatpush.bf16.msrb.mxu3 %v2421_v31  ;;  %v2445_v62 = vor.u32 %v2816_v57, %v2442_v58  ;;  %v2368_v30 = vld [vmem:[#allocation4 + $0x380] sm:$0xf] }
  0xfa   :  { %v844_v54 = vmax.f32 %v840_v22, 0.0 }
  0xfb   :  { %v826_v8 = vrot.slane %v3131_v32, 1 }
  0xfd   :  { %v827_v14 = vsel %vm362_vm1, %v824_v41, %v826_v8  ;;  %v784_v17 = vpop.f32.mrf.mxu0  ;;  %v2417_v41 = vor.u32 %v2811_v35, %v2416_v21  ;;  %1428 = vmatpush.bf16.msra.mxu0 %v2441_v59  ;;  %1283 = vmatpush.bf16.msrb.mxu3 %v2413_v60  ;;  %v2394_v21 = vld [vmem:[#allocation4 + $0x3b8] sm:$0xf0] }
  0xfe   :  { %v835_v23 = vmax.f32 %v3119_v16, %v827_v14  ;;  %v812_v46 = vadd.f32 %v784_v17, %v659_v11  ;;  %v803_v39 = vpop.f32.mrf.mxu1  ;;  %v2453_v16 = vor.u32 %v2818_v51, %v2450_v28  ;;  %v2392_v14 = vld [vmem:[#allocation4 + $0x3b0] sm:$0xf]  ;;  %v2804_v17 = vld [vmem:[#allocation4 + $0x3b4] sm:$0xf]  ;;  %v2377_v28 = vor.u32 %v2801_v26, %v2376_v25  ;;  %v2522_v26 = vld [vmem:[#allocation4 + $0x4b8] sm:$0xf0] }
  0xff   :  { %v813_v27 = vadd.f32 %v803_v39, %v660_v13  ;;  %1264 = vmatpush.bf16.msrb.mxu2 %v2417_v41  ;;  %v2397_v22 = vor.u32 %v2804_v17, %v2394_v21  ;;  %v2802_v39 = vld [vmem:[#allocation4 + $0x3a4] sm:$0xf]  ;;  %v2800_v41 = vld [vmem:[#allocation4 + $0x394] sm:$0xf]  ;;  %v2530_v21 = vld [vmem:[#allocation4 + $0x4c8] sm:$0xf0] }
 0x100   :  { %v841_v29 = vadd.f32 %v3137_v43, %v835_v23  ;;  %1445 = vmatpush.bf16.msra.mxu1 %v2453_v16  ;;  %v2384_v23 = vld [vmem:[#allocation4 + $0x3a0] sm:$0xf]  ;;  %v2381_v31 = vor.u32 %v2800_v41, %v2378_v55  ;;  %v2799_v16 = vld [vmem:[#allocation4 + $0x384] sm:$0xf0] }
 0x101   :  { %v817_v49 = vmax.f32 %v812_v46, %v813_v27  ;;  %1429 = vmatpush.bf16.msra.mxu0 %v2433_v9  ;;  %v2803_v46 = vld [vmem:[#allocation4 + $0x3a4] sm:$0xf0]  ;;  %v2389_v27 = vor.u32 %v2802_v39, %v2386_v24  ;;  %v2545_v9 = vor.u32 %v2843_v6, %v2544_v5  ;;  %v2520_v39 = vld [vmem:[#allocation4 + $0x4b0] sm:$0xf]  ;;  %v2836_v24 = vld [vmem:[#allocation4 + $0x4b4] sm:$0xf] }
 0x102   :  { %v845_v56 = vmax.f32 %v841_v29, 0.0  ;;  %v2385_v53 = vor.u32 %v2803_v46, %v2384_v23  ;;  %v2835_v41 = vld [vmem:[#allocation4 + $0x4a4] sm:$0xf0]  ;;  %v2525_v55 = vor.u32 %v2836_v24, %v2522_v26 }
 0x103   :  { %v828_v40 = vrot.slane %v817_v49, 1  ;;  %1265 = vmatpush.bf16.msrb.mxu2 %v2409_v42 }
 0x104   :  { %v3147_v44 = vpack.c.bf16 %v845_v56, %v844_v54  ;;  %1446 = vmatpush.bf16.msra.mxu1 %v2445_v62  ;;  %v2369_v54 = vor.u32 %v2799_v16, %v2368_v30 }
 0x105   :  { %v829_v1 = vsel %vm362_vm1, %v826_v8, %v828_v40  ;;  %v837_v2 = vmax.f32 %v817_v49, %v828_v40  ;;  %v2405_v8 = vor.u32 %v2806_v63, %v2402_v19  ;;  %v2370_v49 = vld [vmem:[#allocation4 + $0x388] sm:$0xf0]  ;;  %v2552_v19 = vld [vmem:[#allocation4 + $0x4f0] sm:$0xf] }
 0x106   :  { %2878 = vst [vmem:[#allocation2] sm:$0xff] %v3147_v44   ;;  %v836_v0 = vmax.f32 %v3131_v32, %v829_v1  ;;  %1125 = vmatmul.bf16.vlgmr.msrb.gmra.mxu0 %v3147_v44  ;;  %1143 = vmatmul.bf16.vlgmr.msrb.gmra.mxu1 %v3147_v44  ;;  %v2882_v29 = vunpack.c.h.b16 %v3147_v44  ;;  %v2373_v58 = vor.u32 %v2798_v12, %v2370_v49  ;;  %v2844_v1 = vld [vmem:[#allocation4 + $0x4f4] sm:$0xf] }
 0x107   :  { %v843_v7 = vadd.f32 %v3137_v43, %v837_v2  ;;  %1266 = vmatpush.bf16.msrb.mxu2 %v2401_v4  ;;  %1284 = vmatpush.bf16.msrb.mxu3 %v2405_v8  ;;  %v2553_v2 = vor.u32 %v2845_v61, %v2552_v19  ;;  %v2546_v4 = vld [vmem:[#allocation4 + $0x4e8] sm:$0xf0]  ;;  %v2536_v8 = vld [vmem:[#allocation4 + $0x4d0] sm:$0xf]  ;;  %v2832_v49 = vld [vmem:[#allocation4 + $0x494] sm:$0xf] }
 0x108   :  { %v842_v45 = vadd.f32 %v3137_v43, %v836_v0  ;;  %1447 = vmatpush.bf16.msra.mxu1 %v2437_v10  ;;  %v2805_v43 = vld [vmem:[#allocation4 + $0x3b4] sm:$0xf0]  ;;  %v2557_v0 = vor.u32 %v2844_v1, %v2554_v3 }
 0x109   :  { %v847_v11 = vmax.f32 %v843_v7, 0.0  ;;  %v2393_v20 = vor.u32 %v2805_v43, %v2392_v14  ;;  %v2842_v7 = vld [vmem:[#allocation4 + $0x4e4] sm:$0xf]  ;;  %v2841_v10 = vld [vmem:[#allocation4 + $0x4d4] sm:$0xf0] }
 0x10a   :  { %v846_v32 = vmax.f32 %v842_v45, 0.0  ;;  %v2549_v45 = vor.u32 %v2842_v7, %v2546_v4  ;;  %v2528_v14 = vld [vmem:[#allocation4 + $0x4c0] sm:$0xf]  ;;  %v2839_v43 = vld [vmem:[#allocation4 + $0x4c4] sm:$0xf0] }
 0x10b   :  { %v851_v34 = vpack.c.bf16 %v847_v11, %v847_v11  ;;  %1267 = vmatpush.bf16.msrb.mxu2 %v2393_v20  ;;  %1285 = vmatpush.bf16.msrb.mxu3 %v2397_v22  ;;  %v2838_v20 = vld [vmem:[#allocation4 + $0x4c4] sm:$0xf] }
 0x10c   :  { %v850_v13 = vpack.c.bf16 %v846_v32, %v846_v32  ;;  %v2533_v22 = vor.u32 %v2838_v20, %v2530_v21 }
 0x10d   :  { %v859_v15 = vsel %vm3159_vm6, %v851_v34, %v858_v38  ;;  %v881_v35 = vld [vmem:[#allocation2] sm:$0xe]  ;;  %v2959_v37 = vld [vmem:[#allocation2] sm:$0xf0]   ;;  %v2538_v38 = vld [vmem:[#allocation4 + $0x4d8] sm:$0xf0]  ;;  %v2537_v34 = vor.u32 %v2841_v10, %v2536_v8 }
 0x10e   :  { %854 = vst [vmem:[#allocation2 + $0x8] sm:$0xf] %v850_v13  ;;  %v903_v51 = vunpack.c.l.b16 %v881_v35  ;;  %v2951_v62 = vld [vmem:[#allocation2] sm:$0x8]  ;;  %v2541_v13 = vor.u32 %v2840_v36, %v2538_v38  ;;  %v2529_v35 = vor.u32 %v2839_v43, %v2528_v14 }
 0x10f   :  { %860 = vst [vmem:[#allocation2 + $0xc] sm:$0x3] %v859_v15  ;;  %1268 = vmatpush.bf16.msrb.mxu2 %v2385_v53  ;;  %1286 = vmatpush.bf16.msrb.mxu3 %v2389_v27  ;;  %v2952_v11 = vor.u32 %v2959_v37, %v2951_v62  ;;  %v2837_v53 = vld [vmem:[#allocation4 + $0x4b4] sm:$0xf0]  ;;  %v2512_v27 = vld [vmem:[#allocation4 + $0x4a0] sm:$0xf] }
 0x110   :  { %v906_v50 = vpack.c.b16 %v2882_v29, %v903_v51  ;;  %v2521_v25 = vor.u32 %v2837_v53, %v2520_v39  ;;  %v2834_v51 = vld [vmem:[#allocation4 + $0x4a4] sm:$0xf]  ;;  %v2513_v30 = vor.u32 %v2835_v41, %v2512_v27 }
 0x111   :  { %v1337_v17 = vrot.slane %v2952_v11, 3 }
 0x112   :  { %v908_v40 = vrot.slane %v906_v50, 1  ;;  %v2506_v50 = vld [vmem:[#allocation4 + $0x498] sm:$0xf0] }
 0x113   :  { %1269 = vmatpush.bf16.msrb.mxu2 %v2377_v28  ;;  %1287 = vmatpush.bf16.msrb.mxu3 %v2381_v31  ;;  %v2514_v28 = vld [vmem:[#allocation4 + $0x4a8] sm:$0xf0]  ;;  %v1153_v31 = vld [vmem:[#allocation2] sm:$0xc] }
 0x114   :  { %v2517_v12 = vor.u32 %v2834_v51, %v2514_v28 }
 0x115   :  { %v882_v33 = vld [vmem:[#allocation2 + $0x8] sm:$0x7] }
 0x116   :  { %v863_v47 = vld [vmem:[#allocation2 + $0x8] sm:$0x3]  ;;  %v905_v52 = vunpack.c.l.b16 %v882_v33  ;;  %v2960_v60 = vld [vmem:[#allocation2 + $0x8] sm:$0x10]  ;;  %v2504_v33 = vld [vmem:[#allocation4 + $0x490] sm:$0xf] }
 0x117   :  { %v1032_v18 = vunpack.c.l.b16 %v863_v47  ;;  %v3168_v59 = vld [vmem:[#allocation2 + $0x4] sm:$0xff]   ;;  %1270 = vmatpush.bf16.msrb.mxu2 %v2369_v54  ;;  %1288 = vmatpush.bf16.msrb.mxu3 %v2373_v58  ;;  %v2833_v47 = vld [vmem:[#allocation4 + $0x494] sm:$0xf0]  ;;  %v1464_v44 = vld [vmem:[#allocation2 + $0xc] sm:$0x3] }
 0x118   :  { %v907_v56 = vpack.c.b16 %v905_v52, %v905_v52  ;;  %v2958_v48 = vld [vmem:[#allocation2 + $0x8] sm:$0xf]  ;;  %v1174_v52 = vunpack.c.l.b16 %v1153_v31  ;;  %v2852_v31 = vld [vmem:[%s3275_s2 + $0x30] sm:$0xff] }
 0x119   :  { %v1034_v57 = vpack.c.b16 %v1032_v18, %v1032_v18  ;;  %v2957_v32 = vor.u32 %v2960_v60, %v2958_v48  ;;  %v1154_v46 = vld [vmem:[#allocation2 + $0x8] sm:$0xf]  ;;  %v2505_v18 = vor.u32 %v2833_v47, %v2504_v33  ;;  %v2850_v33 = vld [vmem:[%s3275_s2 + $0x20] sm:$0xff]  ;;  %v2849_v47 = vld [vmem:[%s3275_s2 + $0x18] sm:$0xff] }
 0x11a   :  { %v909_v42 = vrot.slane %v907_v56, 1  ;;  %v1175_v16 = vunpack.c.l.b16 %v1154_v46  ;;  %v2509_v56 = vor.u32 %v2832_v49, %v2506_v50  ;;  %v2831_v58 = vld [vmem:[#allocation4 + $0x484] sm:$0xf0]  ;;  %v1176_v48 = vpack.c.b16 %v2882_v29, %v1174_v52 }
 0x11b   :  { %1130 = vmatmul.bf16.gmra.mxu0 %v1034_v57  ;;  %1148 = vmatmul.bf16.gmra.mxu1 %v1034_v57  ;;  %v1338_v15 = vrot.slane %v2957_v32, 3  ;;  %v2496_v57 = vld [vmem:[#allocation4 + $0x480] sm:$0xf]  ;;  %v1483_v29 = vunpack.c.l.b16 %v1464_v44 }
 0x11c   :  { %v910_v63 = vsel %vm362_vm1, %v908_v40, %v909_v42  ;;  %v1177_v54 = vpack.c.b16 %v1175_v16, %v1175_v16  ;;  %v2830_v40 = vld [vmem:[#allocation4 + $0x484] sm:$0xf]  ;;  %v2497_v37 = vor.u32 %v2831_v58, %v2496_v57 }
 0x11d   :  { %1001 = vmatmul.bf16.vlgmr.msra.gmra.mxu2 %v910_v63  ;;  %1019 = vmatmul.bf16.vlgmr.msra.gmra.mxu3 %v910_v63  ;;  %v1339_v23 = vsel %vm1336_vm7, %v1337_v17, %v1338_v15  ;;  %v1178_v63 = vrot.slane %v1176_v48, 2  ;;  %v1485_v61 = vpack.c.b16 %v1483_v29, %v1483_v29  ;;  %v2846_v29 = vld [vmem:[%s3275_s2] sm:$0xff] }
 0x11e   :  { %1568 = vmatpush.bf16.msra.mxu2 %v2553_v2  ;;  %1586 = vmatpush.bf16.msra.mxu3 %v2557_v0  ;;  %v1179_v60 = vrot.slane %v1177_v54, 2  ;;  %v2848_v54 = vld [vmem:[%s3275_s2 + $0x10] sm:$0xff] }
 0x120   :  { %v1180_v19 = vsel %vm682_vm3, %v1178_v63, %v1179_v60 }
 0x122   :  { %1569 = vmatpush.bf16.msra.mxu2 %v2545_v9  ;;  %1587 = vmatpush.bf16.msra.mxu3 %v2549_v45 }
 0x126   :  { %1570 = vmatpush.bf16.msra.mxu2 %v2537_v34  ;;  %1588 = vmatpush.bf16.msra.mxu3 %v2541_v13 }
 0x12a   :  { %1571 = vmatpush.bf16.msra.mxu2 %v2529_v35  ;;  %1589 = vmatpush.bf16.msra.mxu3 %v2533_v22 }
 0x12b   :  { %1430 = vmatmul.bf16.vlgmr.msra.gmra.mxu0 %v1339_v23  ;;  %1448 = vmatmul.bf16.vlgmr.msra.gmra.mxu1 %v1339_v23 }
 0x12d   :  { %1006 = vmatmul.bf16.gmra.mxu2 %v909_v42  ;;  %1024 = vmatmul.bf16.gmra.mxu3 %v909_v42  ;;  %v2498_v42 = vld [vmem:[#allocation4 + $0x488] sm:$0xf0] }
 0x12e   :  { %1572 = vmatpush.bf16.msra.mxu2 %v2521_v25  ;;  %1590 = vmatpush.bf16.msra.mxu3 %v2525_v55  ;;  %v2501_v62 = vor.u32 %v2830_v40, %v2498_v42  ;;  %v2853_v55 = vld [vmem:[%s3275_s2 + $0x38] sm:$0xff]  ;;  %v2847_v40 = vld [vmem:[%s3275_s2 + $0x8] sm:$0xff] }
 0x12f   :  { %1723 = vmatpush.bf16.msrb.mxu0 %v2853_v55  ;;  %v2856_v55 = vld [vmem:[%s3275_s2 + $0x50] sm:$0xff] }
 0x132   :  { %1573 = vmatpush.bf16.msra.mxu2 %v2513_v30  ;;  %1591 = vmatpush.bf16.msra.mxu3 %v2517_v12  ;;  %v2851_v30 = vld [vmem:[%s3275_s2 + $0x28] sm:$0xff] }
 0x133   :  { %1724 = vmatpush.bf16.msrb.mxu0 %v2852_v31 }
 0x136   :  { %1574 = vmatpush.bf16.msra.mxu2 %v2505_v18  ;;  %1592 = vmatpush.bf16.msra.mxu3 %v2509_v56 }
 0x137   :  { %1725 = vmatpush.bf16.msrb.mxu0 %v2851_v30 }
 0x13a   :  { %1575 = vmatpush.bf16.msra.mxu2 %v2497_v37  ;;  %1593 = vmatpush.bf16.msra.mxu3 %v2501_v62 }
 0x13b   :  { %1435 = vmatmul.bf16.gmra.mxu0 %v1338_v15  ;;  %1453 = vmatmul.bf16.gmra.mxu1 %v1338_v15 }
 0x13c   :  { %1726 = vmatpush.bf16.msrb.mxu0 %v2850_v33 }
 0x13d   :  { %1271 = vmatmul.bf16.vlgmr.msrb.gmra.mxu2 %v1180_v19  ;;  %1289 = vmatmul.bf16.vlgmr.msrb.gmra.mxu3 %v1180_v19 }
 0x140   :  { %1727 = vmatpush.bf16.msrb.mxu0 %v2849_v47  ;;  %v2854_v47 = vld [vmem:[%s3275_s2 + $0x40] sm:$0xff] }
 0x144   :  { %1728 = vmatpush.bf16.msrb.mxu0 %v2848_v54  ;;  %v2865_v54 = vld [vmem:[%s3275_s2 + $0x98] sm:$0xff] }
 0x148   :  { %1729 = vmatpush.bf16.msrb.mxu0 %v2847_v40 }
 0x14c   :  { %1730 = vmatpush.bf16.msrb.mxu0 %v2846_v29 }
 0x14d   :  { %1276 = vmatmul.bf16.gmra.mxu2 %v1179_v60  ;;  %1294 = vmatmul.bf16.gmra.mxu3 %v1179_v60 }
 0x15d   :  { %1576 = vmatmul.bf16.vlgmr.msra.gmra.mxu2 %v3168_v59  ;;  %1594 = vmatmul.bf16.vlgmr.msra.gmra.mxu3 %v3168_v59 }
 0x16d   :  { %1581 = vmatmul.bf16.gmra.mxu2 %v1485_v61  ;;  %1599 = vmatmul.bf16.gmra.mxu3 %v1485_v61 }
 0x183   :  { %v1126_v1 = vpop.f32.mrf.mxu0  ;;  %v1144_v2 = vpop.f32.mrf.mxu1 }
 0x18b   :  { %v1128_v3 = vpop.f32.mrf.mxu0  ;;  %v1146_v5 = vpop.f32.mrf.mxu1 }
 0x198   :  { %v1131_v6 = vpop.f32.mrf.mxu0  ;;  %v1149_v0 = vpop.f32.mrf.mxu1 }
 0x1a0   :  { %v1133_v7 = vpop.f32.mrf.mxu0  ;;  %v1151_v4 = vpop.f32.mrf.mxu1 }
 0x1a1   :  { %v1002_v9 = vpop.f32.mrf.mxu2  ;;  %v1020_v45 = vpop.f32.mrf.mxu3 }
 0x1a2   :  { %v1127_v8 = vadd.f32 %v1126_v1, %v1002_v9  ;;  %v1145_v10 = vadd.f32 %v1144_v2, %v1020_v45 }
 0x1a8   :  { %v1431_v11 = vpop.f32.mrf.mxu0  ;;  %v1449_v32 = vpop.f32.mrf.mxu1 }
 0x1a9   :  { %v1004_v59 = vpop.f32.mrf.mxu2  ;;  %v1022_v36 = vpop.f32.mrf.mxu3 }
 0x1aa   :  { %v1129_v38 = vadd.f32 %v1128_v3, %v1004_v59  ;;  %v1147_v34 = vadd.f32 %v1146_v5, %v1022_v36  ;;  %v2893_v36 = vld [vmem:[%s3276_s3 + $0x1] ss:$0 sm:$0xff] }
 0x1b0   :  { %v1433_v13 = vpop.f32.mrf.mxu0  ;;  %v1451_v14 = vpop.f32.mrf.mxu1 }
 0x1b1   :  { %v1007_v43 = vpop.f32.mrf.mxu2  ;;  %v1025_v17 = vpop.f32.mrf.mxu3 }
 0x1b2   :  { %v1132_v62 = vadd.f32 %v1131_v6, %v1007_v43  ;;  %v1150_v63 = vadd.f32 %v1149_v0, %v1025_v17 }
 0x1b8   :  { %v1436_v15 = vpop.f32.mrf.mxu0  ;;  %v1454_v20 = vpop.f32.mrf.mxu1 }
 0x1b9   :  { %v1009_v21 = vpop.f32.mrf.mxu2  ;;  %v1027_v35 = vpop.f32.mrf.mxu3 }
 0x1c0   :  { %v1438_v22 = vpop.f32.mrf.mxu0  ;;  %v1456_v23 = vpop.f32.mrf.mxu1 }
 0x1c1   :  { %v1272_v46 = vpop.f32.mrf.mxu2  ;;  %v1290_v39 = vpop.f32.mrf.mxu3  ;;  %v2858_v22 = vld [vmem:[%s3275_s2 + $0x60] sm:$0xff] }
 0x1c2   :  { %v1299_v53 = vadd.f32 %v1272_v46, %v1127_v8  ;;  %v1300_v24 = vadd.f32 %v1290_v39, %v1145_v10  ;;  %v2861_v8 = vld [vmem:[%s3275_s2 + $0x78] sm:$0xff] }
 0x1c3   :  { %1805 = vmatpush.bf16.msrb.mxu1 %v2861_v8 }
 0x1c4   :  { %v1458_v25 = vadd.f32 %v1431_v11, %v1299_v53  ;;  %v1459_v26 = vadd.f32 %v1449_v32, %v1300_v24  ;;  %v2860_v32 = vld [vmem:[%s3275_s2 + $0x70] sm:$0xff]  ;;  %v1644_v24 = vld [vmem:[#allocation3 + $0x8] sm:$0x1] }
 0x1c7   :  { %1806 = vmatpush.bf16.msrb.mxu1 %v2860_v32 }
 0x1c9   :  { %v1274_v27 = vpop.f32.mrf.mxu2  ;;  %v1292_v41 = vpop.f32.mrf.mxu3 }
 0x1ca   :  { %v1301_v56 = vadd.f32 %v1274_v27, %v1129_v38  ;;  %v1302_v57 = vadd.f32 %v1292_v41, %v1147_v34  ;;  %v2859_v34 = vld [vmem:[%s3275_s2 + $0x68] sm:$0xff]  ;;  %v2857_v27 = vld [vmem:[%s3275_s2 + $0x58] sm:$0xff] }
 0x1cb   :  { %1807 = vmatpush.bf16.msrb.mxu1 %v2859_v34 }
 0x1cc   :  { %v1460_v42 = vadd.f32 %v1433_v13, %v1301_v56  ;;  %v1461_v48 = vadd.f32 %v1451_v14, %v1302_v57  ;;  %v2864_v56 = vld [vmem:[%s3275_s2 + $0x90] sm:$0xff]  ;;  %v2894_v57 = vld [vmem:[%s3276_s3 + $0x2] ss:$0 sm:$0xff] }
 0x1cf   :  { %1808 = vmatpush.bf16.msrb.mxu1 %v2858_v22 }
 0x1d1   :  { %v1277_v51 = vpop.f32.mrf.mxu2  ;;  %v1295_v28 = vpop.f32.mrf.mxu3 }
 0x1d2   :  { %v1303_v61 = vadd.f32 %v1277_v51, %v1132_v62  ;;  %v1304_v1 = vadd.f32 %v1295_v28, %v1150_v63  ;;  %v2855_v51 = vld [vmem:[%s3275_s2 + $0x48] sm:$0xff]  ;;  %v2862_v62 = vld [vmem:[%s3275_s2 + $0x80] sm:$0xff] }
 0x1d3   :  { %1809 = vmatpush.bf16.msrb.mxu1 %v2857_v27  ;;  %v2895_v63 = vld [vmem:[%s3276_s3 + $0x3] ss:$0 sm:$0xff] }
 0x1d4   :  { %v1462_v4 = vadd.f32 %v1436_v15, %v1303_v61  ;;  %v1463_v9 = vadd.f32 %v1454_v20, %v1304_v1 }
 0x1d7   :  { %1810 = vmatpush.bf16.msrb.mxu1 %v2856_v55 }
 0x1d9   :  { %v1279_v16 = vpop.f32.mrf.mxu2  ;;  %v1297_v12 = vpop.f32.mrf.mxu3 }
 0x1db   :  { %1811 = vmatpush.bf16.msrb.mxu1 %v2855_v51 }
 0x1df   :  { %1812 = vmatpush.bf16.msrb.mxu1 %v2854_v47 }
 0x1e1   :  { %v1577_v49 = vpop.f32.mrf.mxu2  ;;  %v1595_v50 = vpop.f32.mrf.mxu3 }
 0x1e2   :  { %v1604_v52 = vadd.f32 %v1577_v49, %v1458_v25  ;;  %v1605_v18 = vadd.f32 %v1595_v50, %v1459_v26  ;;  %v2869_v49 = vld [vmem:[%s3275_s2 + $0xb8] sm:$0xff]  ;;  %v2868_v50 = vld [vmem:[%s3275_s2 + $0xb0] sm:$0xff] }
 0x1e3   :  { %1887 = vmatpush.bf16.msrb.mxu2 %v2869_v49 }
 0x1e4   :  { %v1610_v58 = vmax.f32 %v1604_v52, %v1605_v18  ;;  %v2867_v52 = vld [vmem:[%s3275_s2 + $0xa8] sm:$0xff]  ;;  %v2866_v18 = vld [vmem:[%s3275_s2 + $0xa0] sm:$0xff] }
 0x1e6   :  { %v1617_v3 = vrot.slane %v1610_v58, 2 }
 0x1e7   :  { %1888 = vmatpush.bf16.msrb.mxu2 %v2868_v50 }
 0x1e9   :  { %v1579_v37 = vpop.f32.mrf.mxu2  ;;  %v1597_v60 = vpop.f32.mrf.mxu3 }
 0x1ea   :  { %v1606_v19 = vadd.f32 %v1579_v37, %v1460_v42  ;;  %v1607_v44 = vadd.f32 %v1597_v60, %v1461_v48 }
 0x1eb   :  { %1889 = vmatpush.bf16.msrb.mxu2 %v2867_v52 }
 0x1ec   :  { %v1611_v2 = vmax.f32 %v1606_v19, %v1607_v44 }
 0x1ee   :  { %v1618_v5 = vrot.slane %v1611_v2, 2 }
 0x1ef   :  { %1890 = vmatpush.bf16.msrb.mxu2 %v2866_v18 }
 0x1f0   :  { %v1619_v7 = vsel %vm682_vm3, %v1617_v3, %v1618_v5 }
 0x1f1   :  { %v1625_v45 = vmax.f32 %v1610_v58, %v1619_v7  ;;  %v1582_v6 = vpop.f32.mrf.mxu2  ;;  %v1600_v0 = vpop.f32.mrf.mxu3  ;;  %v2863_v58 = vld [vmem:[%s3275_s2 + $0x88] sm:$0xff]  ;;  %s1908_s2 = sshll.u32 %s3277_s4, 4  ;;  %s1909_s2 = int_to_ptr.hbm [resolvable:$true] %s1908_s2 }
 0x1f2   :  { %v1608_v10 = vadd.f32 %v1582_v6, %v1462_v4  ;;  %v1609_v11 = vadd.f32 %v1600_v0, %v1463_v9 }
 0x1f3   :  { %v1630_v17 = vadd.f32 %v2893_v36, %v1625_v45  ;;  %1891 = vmatpush.bf16.msrb.mxu2 %v2865_v54 }
 0x1f4   :  { %v1612_v59 = vmax.f32 %v1608_v10, %v1609_v11 }
 0x1f5   :  { %v1633_v46 = vmax.f32 %v1630_v17, 0.0 }
 0x1f6   :  { %v1620_v38 = vrot.slane %v1612_v59, 2 }
 0x1f7   :  { %1892 = vmatpush.bf16.msrb.mxu2 %v2864_v56 }
 0x1f8   :  { %v1621_v13 = vsel %vm682_vm3, %v1618_v5, %v1620_v38  ;;  %v1627_v14 = vmax.f32 %v1612_v59, %v1620_v38 }
 0x1f9   :  { %v1626_v43 = vmax.f32 %v1611_v2, %v1621_v13  ;;  %v1584_v15 = vpop.f32.mrf.mxu2  ;;  %v1602_v20 = vpop.f32.mrf.mxu3  ;;  %v2896_v2 = vld [vmem:[%s3276_s3 + $0x4] ss:$0 sm:$0xff] }
 0x1fa   :  { %v1632_v21 = vadd.f32 %v2893_v36, %v1627_v14 }
 0x1fb   :  { %v1631_v35 = vadd.f32 %v2893_v36, %v1626_v43  ;;  %1893 = vmatpush.bf16.msrb.mxu2 %v2863_v58 }
 0x1fc   :  { %v1635_v23 = vmax.f32 %v1632_v21, 0.0 }
 0x1fd   :  { %v1634_v39 = vmax.f32 %v1631_v35, 0.0 }
 0x1fe   :  { %v1638_v25 = vpack.c.bf16 %v1635_v23, %v1635_v23 }
 0x1ff   :  { %v2886_v26 = vpack.c.bf16 %v1634_v39, %v1633_v46  ;;  %1894 = vmatpush.bf16.msrb.mxu2 %v2862_v62 }
 0x200   :  { %v1645_v41 = vsel %vm3217_vm10, %v1638_v25, %v1644_v24 }
 0x201   :  { %2887 = vst [vmem:[#allocation3] sm:$0xff] %v2886_v26  }
 0x202   :  { %1646 = vst [vmem:[#allocation3 + $0x8] sm:$0x1] %v1645_v41 }
 0x208   :  { %v1647_v12 = vld [vmem:[#allocation3] sm:$0x1] }
 0x209   :  { %v1648_v28 = vld [vmem:[#allocation3 + $0x8] sm:$0x1] }
 0x20a   :  { %v1650_v31 = vunpack.c.l.b16 %v1648_v28 }
 0x20c   :  { %v1651_v30 = vpack.c.b16 %v1650_v31, %v1650_v31 }
 0x20e   :  { %v1653_v16 = vshll.u32 %v1651_v30, 16 }
 0x210   :  { %v1656_v33 = vsel %vm3217_vm10, %v1647_v12, %v1653_v16 }
 0x211   :  { %1731 = vmatmul.bf16.vlgmr.msrb.gmra.mxu0 %v1656_v33 }
 0x28e   :  { %v1732_v40 = vpop.f32.mrf.mxu0 }
 0x28f   :  { %v1733_v42 = vadd.f32 %v2894_v57, %v1732_v40 }
 0x291   :  { %v1736_v48 = vmax.f32 %v1733_v42, 0.0 }
 0x293   :  { %v1737_v37 = vpack.c.bf16 %v1736_v48, %v1736_v48 }
 0x295   :  { %1813 = vmatmul.bf16.vlgmr.msrb.gmra.mxu1 %v1737_v37 }
 0x296   :  { %v1734_v60 = vpop.f32.mrf.mxu0 }
 0x312   :  { %v1814_v19 = vpop.f32.mrf.mxu1 }
 0x313   :  { %v1815_v44 = vadd.f32 %v2895_v63, %v1814_v19 }
 0x315   :  { %v1818_v29 = vmax.f32 %v1815_v44, 0.0 }
 0x317   :  { %v1819_v61 = vpack.c.bf16 %v1818_v29, %v1818_v29 }
 0x319   :  { %1895 = vmatmul.bf16.vlgmr.msrb.gmra.mxu2 %v1819_v61 }
 0x31a   :  { %v1816_v1 = vpop.f32.mrf.mxu1 }
 0x39c   :  { %v1896_v3 = vpop.f32.mrf.mxu2 }
 0x39d   :  { %v1897_v5 = vadd.f32 %v2896_v2, %v1896_v3 }
 0x39f   :  { %1900 = vst [vmem:[#allocation7] sm:$0x3] %v1897_v5 }
 0x3a0   :  { %1911 = dma.vmem_to_hbm [thread:$0]  %s1907_s9, 32, %s1909_s2, [#allocation6]  }
 0x3a4   :  { %v1898_v7 = vpop.f32.mrf.mxu2 }
 0x3a5   :  { %2947 = dma.done.wait [#allocation6], 32  }
 0x3a6   :  { %2948 = vsyncadd [#allocation6], 4294967264 }
 0x3a7   :  { %1916 = vsyncpa [#allocation5], 1 }
 0x3a8   :  { %1917 = vsyncpa [#allocation6], 1 }

</bundles_post_ra>
